<compile_context>
chip_gen: v5e
topology: v5e:2x2
jax: 0.10.0
libtpu: 0.0.40
codegen_flags: <defaults>
</compile_context>

<pallas_src>
import functools

import jax
import jax.numpy as jnp
from jax.experimental import pallas as pl
from jax.experimental.pallas import tpu as pltpu


_NEG_SLOPE = 0.2     # LeakyReLU slope used by PyG GATConv
_MASK = -1e30        # additive mask for non-edges (only safe in f32)
_LANE_PAD = 128      # lane-dense width for the final output


def _gat_fused_kernel(x_ref, w1_ref, asrc1_ref, adst1_ref, b1_ref, mbias_ref,
                      w2_ref, asrc2_ref, adst2_ref, b2_ref, out_ref,
                      *, heads, dout):
    """Fused forward: ELU(GATConv1(x)) -> GATConv2 -> log_softmax.

    Layer-1 activations stay head-batched (H, N, F) and never leave VMEM; only
    the final lane-padded (N, 128) log-probabilities are written out."""
    f32, bf16 = jnp.float32, jnp.bfloat16
    n, din = x_ref.shape
    x = x_ref[...].astype(f32)
    mbias = mbias_ref[...]                                   # (N, N) additive mask

    # ------------- layer 1: GATConv(din -> hid per head, H heads, concat) -------------
    # Head-batched linear transform: (H, N, din) x (H, din, F) -> (H, N, F).
    xb = jnp.broadcast_to(x[None, :, :], (heads, n, din))
    h1 = jnp.einsum('hnd,hdf->hnf', xb.astype(bf16), w1_ref[...].astype(bf16),
                    preferred_element_type=f32)              # (H, N, F)

    # Attention logits for all heads at once (softmax math kept in f32).
    e_src = jnp.sum(h1 * asrc1_ref[...][:, None, :], axis=-1)                  # (H, N)
    e_dst = jnp.sum(h1 * adst1_ref[...][:, None, :], axis=-1, keepdims=True)   # (H, N, 1)
    logits = e_dst + e_src[:, None, :]                                         # (H, N, N)
    logits = jnp.where(logits >= 0.0, logits, _NEG_SLOPE * logits)             # LeakyReLU
    logits = logits + mbias[None, :, :]
    logits = logits - jnp.max(logits, axis=-1, keepdims=True)
    p = jnp.exp(logits)                               # masked entries underflow to 0
    denom = jnp.maximum(jnp.sum(p, axis=-1, keepdims=True), 1e-20)             # (H, N, 1)

    # Normalize AFTER the aggregation matmul: N*F multiplies instead of N*N divides,
    # reciprocal on the EUP slot.
    s = jnp.einsum('hij,hjf->hif', p.astype(bf16), h1.astype(bf16),
                   preferred_element_type=f32)                                 # (H, N, F)
    h1_out = s * pl.reciprocal(denom, approx=True) + b1_ref[...][:, None, :]
    h1_out = jnp.where(h1_out > 0.0, h1_out, jnp.exp(h1_out) - 1.0)            # ELU

    # ------------- layer 2: GATConv(H*hid -> dout, 1 head, no concat) -----------------
    # Contraction over (head, feature) done as a head-batched matmul + cheap reduce
    # over heads, so the concat-layout intermediate is never materialized.
    t = jnp.einsum('hnf,hfd->hnd', h1_out.astype(bf16), w2_ref[...].astype(bf16),
                   preferred_element_type=f32)               # (H, N, DP)
    h2 = jnp.sum(t, axis=0)                                  # (N, DP); cols >= dout are 0

    e_src2 = jnp.sum(h2 * asrc2_ref[...], axis=-1, keepdims=True)   # (N, 1)
    e_dst2 = jnp.sum(h2 * adst2_ref[...], axis=-1, keepdims=True)   # (N, 1)
    logits2 = e_dst2 + jnp.transpose(e_src2)                        # (N, N)
    logits2 = jnp.where(logits2 >= 0.0, logits2, _NEG_SLOPE * logits2)
    logits2 = logits2 + mbias
    logits2 = logits2 - jnp.max(logits2, axis=-1, keepdims=True)
    p2 = jnp.exp(logits2)
    denom2 = jnp.maximum(jnp.sum(p2, axis=-1, keepdims=True), 1e-20)
    s2 = jnp.dot(p2.astype(bf16), h2.astype(bf16), preferred_element_type=f32)  # (N, DP)
    out = s2 * pl.reciprocal(denom2, approx=True) + b2_ref[...]

    # log_softmax over the first `dout` lanes only (the rest is lane padding).
    dp = out.shape[-1]
    col = jax.lax.broadcasted_iota(jnp.int32, (n, dp), 1)
    out = jnp.where(col < dout, out, _MASK)
    m = jnp.max(out, axis=-1, keepdims=True)
    sh = out - m
    lse = jnp.log(jnp.sum(jnp.exp(sh), axis=-1, keepdims=True))
    out_ref[...] = (sh - lse).astype(out_ref.dtype)


def gat_forward(x, adj, params, cfg):
    """Fused 2-layer GAT forward.  adj[i, j] == 1 iff edge j -> i (self-loops included)."""
    n = x.shape[0]
    heads = cfg["num_heads"]
    hid = cfg["hidden_layer_GAT"]
    din = cfg["input_layer"]
    dout = cfg["output_layer"]
    dp = ((dout + _LANE_PAD - 1) // _LANE_PAD) * _LANE_PAD   # lane-dense output width

    # Host-side layout prep (one-time graph/parameter preprocessing).
    w1h = params["w1"].reshape(din, heads, hid).transpose(1, 0, 2)          # (H, din, F)
    b1h = params["b1"].reshape(heads, hid)                                  # (H, F)
    w2h = jnp.pad(params["w2"].reshape(heads, hid, dout),
                  ((0, 0), (0, 0), (0, dp - dout)))                         # (H, F, DP)
    asrc2 = jnp.pad(params["a_src2"], ((0, 0), (0, dp - dout)))             # (1, DP)
    adst2 = jnp.pad(params["a_dst2"], ((0, 0), (0, dp - dout)))             # (1, DP)
    b2 = jnp.pad(params["b2"].reshape(1, dout), ((0, 0), (0, dp - dout)))   # (1, DP)
    mask_bias = jnp.where(adj > 0, 0.0, _MASK).astype(jnp.float32)          # (N, N)

    kernel = functools.partial(_gat_fused_kernel, heads=heads, dout=dout)
    vmem = lambda: pl.BlockSpec(memory_space=pltpu.MemorySpace.VMEM)
    # TODO(synk): for large N, add a 1-D grid over destination-row tiles
    # (BlockSpec((TILE_M, N)) for mask_bias, (TILE_M, DP) for the output,
    # dimension_semantics=("parallel",)) so the N^2 adjacency streams through
    # VMEM with double-buffering instead of being fully resident.
    out_padded = pl.pallas_call(
        kernel,
        out_shape=jax.ShapeDtypeStruct((n, dp), jnp.float32),
        in_specs=[vmem() for _ in range(10)],
        out_specs=vmem(),
    )(x, w1h, params["a_src1"], params["a_dst1"], b1h, mask_bias,
      w2h, asrc2, adst2, b2)
    return out_padded[:, :dout]


def init_params(key, cfg):
    din = cfg["input_layer"]
    hid = cfg["hidden_layer_GAT"]
    heads = cfg["num_heads"]
    dout = cfg["output_layer"]
    ks = jax.random.split(key, 8)
    s = 0.1
    return {
        "w1":     s * jax.random.normal(ks[0], (din, heads * hid), jnp.float32),
        "a_src1": s * jax.random.normal(ks[1], (heads, hid), jnp.float32),
        "a_dst1": s * jax.random.normal(ks[2], (heads, hid), jnp.float32),
        "b1":     jnp.zeros((heads * hid,), jnp.float32),
        "w2":     s * jax.random.normal(ks[3], (heads * hid, dout), jnp.float32),
        "a_src2": s * jax.random.normal(ks[4], (1, dout), jnp.float32),
        "a_dst2": s * jax.random.normal(ks[5], (1, dout), jnp.float32),
        "b2":     jnp.zeros((dout,), jnp.float32),
    }


if __name__ == "__main__":
    cfg = {
        "input_layer": 16,
        "hidden_layer_GAT": 8,
        "num_heads": 4,
        "output_layer": 8,
        "dropout_GAT": 0.6,   # inactive at inference (F.dropout == identity)
    }
    N, E = 32, 96

    key = jax.random.PRNGKey(0)
    kx, ke, kp = jax.random.split(key, 3)

    # node features
    x = jax.random.normal(kx, (N, cfg["input_layer"]), jnp.float32)

    # random edge_index (2, E): row 0 = source, row 1 = target (PyG convention)
    edge_index = jax.random.randint(ke, (2, E), 0, N, dtype=jnp.int32)

    # dense adjacency mask adj[dst, src] = 1, plus self-loops (PyG add_self_loops=True)
    adj = jnp.zeros((N, N), jnp.float32)
    adj = adj.at[edge_index[1], edge_index[0]].set(1.0)
    adj = adj.at[jnp.arange(N), jnp.arange(N)].set(1.0)

    params = init_params(kp, cfg)

    out = gat_forward(x, adj, params, cfg)
    out = jax.block_until_ready(out)

    assert out.shape == (N, cfg["output_layer"])
    # log_softmax rows must exponentiate-sum to ~1
    assert bool(jnp.allclose(jnp.sum(jnp.exp(out), axis=1), 1.0, atol=1e-4))
    print("KERNEL_OK")
</pallas_src>

<mosaic_0001>
module attributes {stable_mosaic.version = 11 : i64} {
  func.func @_gat_fused_kernel(%arg0: memref<32x16xf32, #tpu.memory_space<vmem>>, %arg1: memref<4x16x8xf32, #tpu.memory_space<vmem>>, %arg2: memref<4x8xf32, #tpu.memory_space<vmem>>, %arg3: memref<4x8xf32, #tpu.memory_space<vmem>>, %arg4: memref<4x8xf32, #tpu.memory_space<vmem>>, %arg5: memref<32x32xf32, #tpu.memory_space<vmem>>, %arg6: memref<4x8x128xf32, #tpu.memory_space<vmem>>, %arg7: memref<1x128xf32, #tpu.memory_space<vmem>>, %arg8: memref<1x128xf32, #tpu.memory_space<vmem>>, %arg9: memref<1x128xf32, #tpu.memory_space<vmem>>, %arg10: memref<32x128xf32, #tpu.memory_space<vmem>>) attributes {dimension_semantics = [], scalar_prefetch = 0 : i64, scratch_operands = 0 : i64, tpu.core_type = #tpu.core_type<tc>} {
    %c0 = arith.constant 0 : index
    %c0_0 = arith.constant 0 : index
    %0 = vector.load %arg0[%c0, %c0_0] : memref<32x16xf32, #tpu.memory_space<vmem>>, vector<32x16xf32>
    %c0_1 = arith.constant 0 : index
    %c0_2 = arith.constant 0 : index
    %1 = vector.load %arg5[%c0_1, %c0_2] : memref<32x32xf32, #tpu.memory_space<vmem>>, vector<32x32xf32>
    %2 = vector.shape_cast %0 : vector<32x16xf32> to vector<1x32x16xf32>
    %3 = vector.shape_cast %2 : vector<1x32x16xf32> to vector<1x32x16xf32>
    %4 = vector.broadcast %3 : vector<1x32x16xf32> to vector<4x32x16xf32>
    %5 = arith.truncf %4 : vector<4x32x16xf32> to vector<4x32x16xbf16>
    %c0_3 = arith.constant 0 : index
    %c0_4 = arith.constant 0 : index
    %c0_5 = arith.constant 0 : index
    %6 = vector.load %arg1[%c0_3, %c0_4, %c0_5] : memref<4x16x8xf32, #tpu.memory_space<vmem>>, vector<4x16x8xf32>
    %7 = arith.truncf %6 : vector<4x16x8xf32> to vector<4x16x8xbf16>
    "tpu.trace_start"() <{level = 10 : i32, message = "hnd,hdf->hnf"}> : () -> ()
    %cst = arith.constant dense<0.000000e+00> : vector<4x32x8xf32>
    %8 = tpu.matmul %5, %7, %cst {dimension_numbers = #tpu.dot_dimension_numbers<[2], [1], [1], [2], [0, 0, 0, 1, 1, 2], [0], [0]>} : vector<4x32x16xbf16>, vector<4x16x8xbf16>, vector<4x32x8xf32> -> vector<4x32x8xf32>
    "tpu.trace_stop"() : () -> ()
    %c0_6 = arith.constant 0 : index
    %c0_7 = arith.constant 0 : index
    %9 = vector.load %arg2[%c0_6, %c0_7] : memref<4x8xf32, #tpu.memory_space<vmem>>, vector<4x8xf32>
    %10 = vector.shape_cast %9 : vector<4x8xf32> to vector<4x1x8xf32>
    %11 = vector.broadcast %10 : vector<4x1x8xf32> to vector<4x32x8xf32>
    %12 = arith.mulf %8, %11 : vector<4x32x8xf32>
    %cst_8 = arith.constant dense<0.000000e+00> : vector<4x32xf32>
    %13 = vector.multi_reduction <add>, %12, %cst_8 [2] : vector<4x32x8xf32> to vector<4x32xf32>
    %c0_9 = arith.constant 0 : index
    %c0_10 = arith.constant 0 : index
    %14 = vector.load %arg3[%c0_9, %c0_10] : memref<4x8xf32, #tpu.memory_space<vmem>>, vector<4x8xf32>
    %15 = vector.shape_cast %14 : vector<4x8xf32> to vector<4x1x8xf32>
    %16 = vector.broadcast %15 : vector<4x1x8xf32> to vector<4x32x8xf32>
    %17 = arith.mulf %8, %16 : vector<4x32x8xf32>
    %cst_11 = arith.constant dense<0.000000e+00> : vector<4x32xf32>
    %18 = vector.multi_reduction <add>, %17, %cst_11 [2] : vector<4x32x8xf32> to vector<4x32xf32>
    %19 = vector.shape_cast %18 : vector<4x32xf32> to vector<4x32x1xf32>
    %20 = vector.shape_cast %13 : vector<4x32xf32> to vector<4x1x32xf32>
    %21 = vector.broadcast %19 : vector<4x32x1xf32> to vector<4x32x32xf32>
    %22 = vector.broadcast %20 : vector<4x1x32xf32> to vector<4x32x32xf32>
    %23 = arith.addf %21, %22 : vector<4x32x32xf32>
    %cst_12 = arith.constant 0.000000e+00 : f32
    %24 = vector.broadcast %cst_12 : f32 to vector<4x32x32xf32>
    %25 = arith.cmpf oge, %23, %24 : vector<4x32x32xf32>
    %cst_13 = arith.constant 2.000000e-01 : f32
    %26 = vector.broadcast %cst_13 : f32 to vector<4x32x32xf32>
    %27 = arith.mulf %26, %23 : vector<4x32x32xf32>
    %28 = arith.select %25, %23, %27 : vector<4x32x32xi1>, vector<4x32x32xf32>
    %29 = vector.shape_cast %1 : vector<32x32xf32> to vector<1x32x32xf32>
    %30 = vector.broadcast %29 : vector<1x32x32xf32> to vector<4x32x32xf32>
    %31 = arith.addf %28, %30 : vector<4x32x32xf32>
    %cst_14 = arith.constant dense<0xFF800000> : vector<4x32xf32>
    %32 = vector.multi_reduction <maximumf>, %31, %cst_14 [2] : vector<4x32x32xf32> to vector<4x32xf32>
    %33 = vector.shape_cast %32 : vector<4x32xf32> to vector<4x32x1xf32>
    %34 = vector.broadcast %33 : vector<4x32x1xf32> to vector<4x32x32xf32>
    %35 = arith.subf %31, %34 : vector<4x32x32xf32>
    %36 = math.exp %35 : vector<4x32x32xf32>
    %cst_15 = arith.constant dense<0.000000e+00> : vector<4x32xf32>
    %37 = vector.multi_reduction <add>, %36, %cst_15 [2] : vector<4x32x32xf32> to vector<4x32xf32>
    %38 = vector.shape_cast %37 : vector<4x32xf32> to vector<4x32x1xf32>
    %cst_16 = arith.constant 9.99999968E-21 : f32
    %39 = vector.broadcast %cst_16 : f32 to vector<4x32x1xf32>
    %40 = arith.maximumf %38, %39 : vector<4x32x1xf32>
    %41 = arith.truncf %36 : vector<4x32x32xf32> to vector<4x32x32xbf16>
    %42 = arith.truncf %8 : vector<4x32x8xf32> to vector<4x32x8xbf16>
    "tpu.trace_start"() <{level = 10 : i32, message = "hij,hjf->hif"}> : () -> ()
    %cst_17 = arith.constant dense<0.000000e+00> : vector<4x32x8xf32>
    %43 = tpu.matmul %41, %42, %cst_17 {dimension_numbers = #tpu.dot_dimension_numbers<[2], [1], [1], [2], [0, 0, 0, 1, 1, 2], [0], [0]>} : vector<4x32x32xbf16>, vector<4x32x8xbf16>, vector<4x32x8xf32> -> vector<4x32x8xf32>
    "tpu.trace_stop"() : () -> ()
    %44 = tpu.reciprocal %40 {approx = true} : vector<4x32x1xf32> -> vector<4x32x1xf32>
    %45 = vector.broadcast %44 : vector<4x32x1xf32> to vector<4x32x8xf32>
    %46 = arith.mulf %43, %45 : vector<4x32x8xf32>
    %c0_18 = arith.constant 0 : index
    %c0_19 = arith.constant 0 : index
    %47 = vector.load %arg4[%c0_18, %c0_19] : memref<4x8xf32, #tpu.memory_space<vmem>>, vector<4x8xf32>
    %48 = vector.shape_cast %47 : vector<4x8xf32> to vector<4x1x8xf32>
    %49 = vector.broadcast %48 : vector<4x1x8xf32> to vector<4x32x8xf32>
    %50 = arith.addf %46, %49 : vector<4x32x8xf32>
    %cst_20 = arith.constant 0.000000e+00 : f32
    %51 = vector.broadcast %cst_20 : f32 to vector<4x32x8xf32>
    %52 = arith.cmpf ogt, %50, %51 : vector<4x32x8xf32>
    %53 = math.exp %50 : vector<4x32x8xf32>
    %cst_21 = arith.constant 1.000000e+00 : f32
    %54 = vector.broadcast %cst_21 : f32 to vector<4x32x8xf32>
    %55 = arith.subf %53, %54 : vector<4x32x8xf32>
    %56 = arith.select %52, %50, %55 : vector<4x32x8xi1>, vector<4x32x8xf32>
    %57 = arith.truncf %56 : vector<4x32x8xf32> to vector<4x32x8xbf16>
    %c0_22 = arith.constant 0 : index
    %c0_23 = arith.constant 0 : index
    %c0_24 = arith.constant 0 : index
    %58 = vector.load %arg6[%c0_22, %c0_23, %c0_24] : memref<4x8x128xf32, #tpu.memory_space<vmem>>, vector<4x8x128xf32>
    %59 = arith.truncf %58 : vector<4x8x128xf32> to vector<4x8x128xbf16>
    "tpu.trace_start"() <{level = 10 : i32, message = "hnf,hfd->hnd"}> : () -> ()
    %cst_25 = arith.constant dense<0.000000e+00> : vector<4x32x128xf32>
    %60 = tpu.matmul %57, %59, %cst_25 {dimension_numbers = #tpu.dot_dimension_numbers<[2], [1], [1], [2], [0, 0, 0, 1, 1, 2], [0], [0]>} : vector<4x32x8xbf16>, vector<4x8x128xbf16>, vector<4x32x128xf32> -> vector<4x32x128xf32>
    "tpu.trace_stop"() : () -> ()
    %cst_26 = arith.constant dense<0.000000e+00> : vector<32x128xf32>
    %61 = vector.multi_reduction <add>, %60, %cst_26 [0] : vector<4x32x128xf32> to vector<32x128xf32>
    %c0_27 = arith.constant 0 : index
    %c0_28 = arith.constant 0 : index
    %62 = vector.load %arg7[%c0_27, %c0_28] : memref<1x128xf32, #tpu.memory_space<vmem>>, vector<1x128xf32>
    %63 = vector.broadcast %62 : vector<1x128xf32> to vector<32x128xf32>
    %64 = arith.mulf %61, %63 : vector<32x128xf32>
    %cst_29 = arith.constant dense<0.000000e+00> : vector<32xf32>
    %65 = vector.multi_reduction <add>, %64, %cst_29 [1] : vector<32x128xf32> to vector<32xf32>
    %66 = vector.shape_cast %65 : vector<32xf32> to vector<32x1xf32>
    %c0_30 = arith.constant 0 : index
    %c0_31 = arith.constant 0 : index
    %67 = vector.load %arg8[%c0_30, %c0_31] : memref<1x128xf32, #tpu.memory_space<vmem>>, vector<1x128xf32>
    %68 = vector.broadcast %67 : vector<1x128xf32> to vector<32x128xf32>
    %69 = arith.mulf %61, %68 : vector<32x128xf32>
    %cst_32 = arith.constant dense<0.000000e+00> : vector<32xf32>
    %70 = vector.multi_reduction <add>, %69, %cst_32 [1] : vector<32x128xf32> to vector<32xf32>
    %71 = vector.shape_cast %70 : vector<32xf32> to vector<32x1xf32>
    %72 = tpu.transpose %66, [1, 0] : vector<32x1xf32> -> vector<1x32xf32>
    %73 = vector.broadcast %71 : vector<32x1xf32> to vector<32x32xf32>
    %74 = vector.broadcast %72 : vector<1x32xf32> to vector<32x32xf32>
    %75 = arith.addf %73, %74 : vector<32x32xf32>
    %cst_33 = arith.constant 0.000000e+00 : f32
    %76 = vector.broadcast %cst_33 : f32 to vector<32x32xf32>
    %77 = arith.cmpf oge, %75, %76 : vector<32x32xf32>
    %cst_34 = arith.constant 2.000000e-01 : f32
    %78 = vector.broadcast %cst_34 : f32 to vector<32x32xf32>
    %79 = arith.mulf %78, %75 : vector<32x32xf32>
    %80 = arith.select %77, %75, %79 : vector<32x32xi1>, vector<32x32xf32>
    %81 = arith.addf %80, %1 : vector<32x32xf32>
    %cst_35 = arith.constant dense<0xFF800000> : vector<32xf32>
    %82 = vector.multi_reduction <maximumf>, %81, %cst_35 [1] : vector<32x32xf32> to vector<32xf32>
    %83 = vector.shape_cast %82 : vector<32xf32> to vector<32x1xf32>
    %84 = vector.broadcast %83 : vector<32x1xf32> to vector<32x32xf32>
    %85 = arith.subf %81, %84 : vector<32x32xf32>
    %86 = math.exp %85 : vector<32x32xf32>
    %cst_36 = arith.constant dense<0.000000e+00> : vector<32xf32>
    %87 = vector.multi_reduction <add>, %86, %cst_36 [1] : vector<32x32xf32> to vector<32xf32>
    %88 = vector.shape_cast %87 : vector<32xf32> to vector<32x1xf32>
    %cst_37 = arith.constant 9.99999968E-21 : f32
    %89 = vector.broadcast %cst_37 : f32 to vector<32x1xf32>
    %90 = arith.maximumf %88, %89 : vector<32x1xf32>
    %91 = arith.truncf %86 : vector<32x32xf32> to vector<32x32xbf16>
    %92 = arith.truncf %61 : vector<32x128xf32> to vector<32x128xbf16>
    %cst_38 = arith.constant dense<0.000000e+00> : vector<32x128xf32>
    %93 = tpu.matmul %91, %92, %cst_38 {dimension_numbers = #tpu.dot_dimension_numbers<[1], [0], [0], [1], [0, 0, 1, 1], [], []>} : vector<32x32xbf16>, vector<32x128xbf16>, vector<32x128xf32> -> vector<32x128xf32>
    %94 = tpu.reciprocal %90 {approx = true} : vector<32x1xf32> -> vector<32x1xf32>
    %95 = vector.broadcast %94 : vector<32x1xf32> to vector<32x128xf32>
    %96 = arith.mulf %93, %95 : vector<32x128xf32>
    %c0_39 = arith.constant 0 : index
    %c0_40 = arith.constant 0 : index
    %97 = vector.load %arg9[%c0_39, %c0_40] : memref<1x128xf32, #tpu.memory_space<vmem>>, vector<1x128xf32>
    %98 = vector.broadcast %97 : vector<1x128xf32> to vector<32x128xf32>
    %99 = arith.addf %96, %98 : vector<32x128xf32>
    %100 = tpu.iota {dimensions = array<i32: 1>} : vector<32x128xi32>
    %c8_i32 = arith.constant 8 : i32
    %101 = vector.broadcast %c8_i32 : i32 to vector<32x128xi32>
    %102 = arith.cmpi slt, %100, %101 : vector<32x128xi32>
    %cst_41 = arith.constant -1.000000e+30 : f32
    %103 = vector.broadcast %cst_41 : f32 to vector<32x128xf32>
    %104 = arith.select %102, %99, %103 : vector<32x128xi1>, vector<32x128xf32>
    %cst_42 = arith.constant dense<0xFF800000> : vector<32xf32>
    %105 = vector.multi_reduction <maximumf>, %104, %cst_42 [1] : vector<32x128xf32> to vector<32xf32>
    %106 = vector.shape_cast %105 : vector<32xf32> to vector<32x1xf32>
    %107 = vector.broadcast %106 : vector<32x1xf32> to vector<32x128xf32>
    %108 = arith.subf %104, %107 : vector<32x128xf32>
    %109 = math.exp %108 : vector<32x128xf32>
    %cst_43 = arith.constant dense<0.000000e+00> : vector<32xf32>
    %110 = vector.multi_reduction <add>, %109, %cst_43 [1] : vector<32x128xf32> to vector<32xf32>
    %111 = vector.shape_cast %110 : vector<32xf32> to vector<32x1xf32>
    %112 = math.log %111 : vector<32x1xf32>
    %113 = vector.broadcast %112 : vector<32x1xf32> to vector<32x128xf32>
    %114 = arith.subf %108, %113 : vector<32x128xf32>
    %c0_44 = arith.constant 0 : index
    %c0_45 = arith.constant 0 : index
    %115 = vector.load %arg10[%c0_44, %c0_45] : memref<32x128xf32, #tpu.memory_space<vmem>>, vector<32x128xf32>
    tpu.vector_store %arg10[%c0_44, %c0_45], %114 {strides = array<i32>} : memref<32x128xf32, #tpu.memory_space<vmem>>, vector<32x128xf32>,
    return
  }
}

</mosaic_0001>

<bundles_post_ra>
// kernel: tpu_custom_call.1
= control target key start
LH: loop header
LB: loop body
LE: loop exit
PB: predicated region body
PF: predicated region fallthrough
CT: control target
= control target key end

     0   :  { %s2265_s0 = inlined_call_operand.vmem [shape: f32[32,16], index: 0, kind: input, shape index: {}]   ;;  %s2266_s1 = inlined_call_operand.vmem [shape: f32[4,16,8], index: 1, kind: input, shape index: {}]   ;;  %s2267_s2 = inlined_call_operand.vmem [shape: f32[4,8], index: 2, kind: input, shape index: {}]   ;;  %s2268_s3 = inlined_call_operand.vmem [shape: f32[4,8], index: 3, kind: input, shape index: {}]   ;;  %s2269_s4 = inlined_call_operand.vmem [shape: f32[4,8], index: 4, kind: input, shape index: {}]   ;;  %s2270_s5 = inlined_call_operand.vmem [shape: f32[32,32], index: 5, kind: input, shape index: {}]   ;;  %s2271_s6 = inlined_call_operand.vmem [shape: f32[4,8,128], index: 6, kind: input, shape index: {}]   ;;  %s2272_s7 = inlined_call_operand.vmem [shape: f32[1,128], index: 7, kind: input, shape index: {}]   ;;  %s2273_s8 = inlined_call_operand.vmem [shape: f32[1,128], index: 8, kind: input, shape index: {}]   ;;  %s2274_s9 = inlined_call_operand.vmem [shape: f32[1,128], index: 9, kind: input, shape index: {}]   ;;  %s2275_s10 = inlined_call_operand.hbm [shape: f32[32,128], index: 10, kind: output, shape index: {}]  }
   0x1   :  { %v49_v0 = vld [vmem:[%s2266_s1] sm:$0xff]  ;;  %v50_v1 = vld [vmem:[%s2266_s1 + $0x8] sm:$0xff]  ;;  %v55_v7 = vld [vmem:[%s2266_s1 + $0x30] sm:$0xff] }
   0x2   :  { %v53_v2 = vld [vmem:[%s2266_s1 + $0x20] sm:$0xff]  ;;  %v57_v3 = vpack.c.bf16 %v49_v0, %v49_v0  ;;  %v58_v4 = vpack.c.bf16 %v50_v1, %v50_v1  ;;  %v54_v5 = vld [vmem:[%s2266_s1 + $0x28] sm:$0xff]  ;;  %v56_v8 = vld [vmem:[%s2266_s1 + $0x38] sm:$0xff]  ;;  %v63_v10 = vpack.c.bf16 %v55_v7, %v55_v7 }
   0x3   :  { %v61_v6 = vpack.c.bf16 %v53_v2, %v53_v2  ;;  %v62_v9 = vpack.c.bf16 %v54_v5, %v54_v5  ;;  %v64_v11 = vpack.c.bf16 %v56_v8, %v56_v8  ;;  %v37_v12 = vld [vmem:[%s2265_s0] sm:$0xff]  ;;  %v38_v13 = vld [vmem:[%s2265_s0 + $0x8] sm:$0xff]  ;;  %v39_v14 = vld [vmem:[%s2265_s0 + $0x10] sm:$0xff] }
   0x4   :  { %v77_v15 = vunpack.c.l.b16 %v57_v3  ;;  %v78_v16 = vunpack.c.l.b16 %v58_v4  ;;  %v45_v18 = vpack.c.bf16 %v37_v12, %v37_v12  ;;  %v40_v19 = vld [vmem:[%s2265_s0 + $0x18] sm:$0xff]  ;;  %v51_v20 = vld [vmem:[%s2266_s1 + $0x10] sm:$0xff]  ;;  %v159_v23 = vunpack.c.l.b16 %v63_v10 }
   0x5   :  { %v134_v17 = vunpack.c.l.b16 %v61_v6  ;;  %v52_v21 = vld [vmem:[%s2266_s1 + $0x18] sm:$0xff]  ;;  %v135_v22 = vunpack.c.l.b16 %v62_v9  ;;  %v160_v24 = vunpack.c.l.b16 %v64_v11  ;;  %v46_v25 = vpack.c.bf16 %v38_v13, %v38_v13 }
   0x6   :  { %v79_v26 = vpack.c.b16 %v78_v16, %v77_v15  ;;  %v69_v27 = vunpack.c.l.b16 %v45_v18  ;;  %v47_v28 = vpack.c.bf16 %v39_v14, %v39_v14  ;;  %v48_v29 = vpack.c.bf16 %v40_v19, %v40_v19 }
   0x7   :  { %15 = vsyncpa [#allocation3], 0  ;;  %v136_v30 = vpack.c.b16 %v135_v22, %v134_v17  ;;  %v161_v31 = vpack.c.b16 %v160_v24, %v159_v23  ;;  %v70_v32 = vunpack.c.l.b16 %v46_v25  ;;  %v59_v33 = vpack.c.bf16 %v51_v20, %v51_v20  ;;  %v1764_v42 = vld [vmem:[%s2267_s2] sm:$0xf]  ;;  %s1439_s23 = sshll.u32 %s2275_s10, 4  ;;  %s1660_s24 = smov 128   ;;  %s1440_s23 = int_to_ptr.hbm [resolvable:$true] %s1439_s23 }
   0x8   :  { %95 = vmatpush.bf16.msra.mxu0 %v79_v26  ;;  %1493 = vmatpush.bf16.msra.mxu1 %v79_v26  ;;  %vm81_vm0 = vcmask 130048   ;;  %v71_v34 = vunpack.c.l.b16 %v47_v28  ;;  %v72_v35 = vunpack.c.l.b16 %v48_v29  ;;  %v60_v36 = vpack.c.bf16 %v52_v21, %v52_v21  ;;  %v260_v43 = vld [vmem:[%s2268_s3] sm:$0xf]  ;;  %s1661_s25 = smov 8  }
   0x9   :  { %145 = vmatpush.bf16.msra.mxu2 %v136_v30  ;;  %170 = vmatpush.bf16.msra.mxu3 %v161_v31  ;;  %v73_v37 = vpack.c.b16 %v70_v32, %v69_v27  ;;  %v109_v38 = vunpack.c.l.b16 %v59_v33  ;;  %v187_v44 = vperm.slane %v1764_v42, 0  ;;  %v1770_v45 = vperm.slane %v260_v43, 0 }
   0xa   :  { %v74_v39 = vpack.c.b16 %v72_v35, %v71_v34  ;;  %v110_v40 = vunpack.c.l.b16 %v60_v36  ;;  %vm211_vm1 = vcmask 64512   ;;  %v185_v47 = vrot.slane %v1764_v42, 2 }
   0xb   :  { %1451 = vmatmul.msk.bf16.vlgmr.msra.gmra.mxu0 %vm81_vm0, %v73_v37  ;;  %v264_v51 = vrot.slane %v260_v43, 3  ;;  %v186_v52 = vrot.slane %v1764_v42, 3  ;;  %v263_v62 = vrot.slane %v260_v43, 2  ;;  %v262_v17 = vrot.slane %v260_v43, 1 }
   0xc   :  { %1452 = vmatmul.msk.bf16.vlgmr.msra.gmra.mxu1 %vm81_vm0, %v74_v39  ;;  %1455 = vmatmul.msk.bf16.vlgmr.msra.gmra.mxu2 %vm81_vm0, %v73_v37  ;;  %v111_v41 = vpack.c.b16 %v110_v40, %v109_v38  ;;  %v1781_v58 = vperm.slane %v185_v47, 0  ;;  %vm358_vm2 = vcmask 130112   ;;  %vm362_vm3 = vcmask 195712  }
   0xd   :  { %1457 = vmatmul.msk.bf16.vlgmr.msra.gmra.mxu3 %vm81_vm0, %v73_v37  ;;  %v1783_v59 = vperm.slane %v264_v51, 0  ;;  %v1785_v60 = vperm.slane %v186_v52, 0  ;;  %v1804_v11 = vperm.slane %v263_v62, 0  ;;  %v1813_v26 = vperm.slane %v262_v17, 0 }
   0xe   :  { %120 = vmatpush.bf16.msrb.mxu1 %v111_v41  ;;  %vm366_vm4 = vcmask 261312   ;;  %vm503_vm6 = vcmask 261120  }
  0x1c   :  { %1453 = vmatmul.msk.bf16.vlgmr.msrb.gmra.mxu1 %vm81_vm0, %v73_v37  ;;  %1456 = vmatmul.msk.bf16.gmra.mxu2 %vm81_vm0, %v74_v39 }
  0x1d   :  { %1458 = vmatmul.msk.bf16.gmra.mxu3 %vm81_vm0, %v74_v39 }
  0x2c   :  { %1454 = vmatmul.msk.bf16.gmra.mxu1 %vm81_vm0, %v74_v39 }
  0x88   :  { %v97_v46 = vpop.f32.mrf.mxu0 }
  0x89   :  { %v102_v48 = vpop.f32.mrf.mxu1  ;;  %v273_v49 = vmul.f32 %v1770_v45, %v97_v46  ;;  %v195_v50 = vmul.f32 %v187_v44, %v97_v46  ;;  %v680_v12 = vpack.c.bf16 %v97_v46, %v97_v46  ;;  %v184_v46 = vrot.slane %v1764_v42, 1 }
  0x8a   :  { %v197_v53 = vmul.f32 %v187_v44, %v102_v48  ;;  %v1776_v54 = vmul.f32 %v1770_v45, %v102_v48  ;;  %v682_v63 = vpack.c.bf16 %v102_v48, %v102_v48 }
  0x8b   :  { %v289_v55 = vsel %vm211_vm1, %v273_v49, 0.0  ;;  %v212_v56 = vsel %vm211_vm1, %v195_v50, 0.0  ;;  %v710_v21 = vunpack.c.l.b16 %v680_v12 }
  0x8c   :  { %v218_v57 = vsel %vm211_vm1, %v197_v53, 0.0  ;;  %290 = vadd.xlane.f32.xlu2 %v289_v55  ;;  %213 = vadd.xlane.f32.xlu0 %v212_v56  ;;  %v712_v13 = vunpack.c.l.b16 %v682_v63 }
  0x8d   :  { %219 = vadd.xlane.f32.xlu1 %v218_v57 }
  0x8f   :  { %v1787_v61 = vpop.f32.mrf.mxu2 }
  0x90   :  { %v1789_v0 = vpop.f32.mrf.mxu3  ;;  %v99_v1 = vpop.f32.mrf.mxu0  ;;  %v203_v2 = vmul.f32 %v1781_v58, %v1787_v61  ;;  %v281_v19 = vmul.f32 %v1804_v11, %v1787_v61  ;;  %v688_v42 = vpack.c.bf16 %v1787_v61, %v1787_v61 }
  0x91   :  { %v1793_v3 = vpop.f32.mrf.mxu1  ;;  %v285_v4 = vmul.f32 %v1783_v59, %v1789_v0  ;;  %v207_v5 = vmul.f32 %v1785_v60, %v1789_v0  ;;  %v681_v6 = vpack.c.bf16 %v99_v1, %v99_v1  ;;  %v196_v23 = vmul.f32 %v187_v44, %v99_v1 }
  0x92   :  { %v683_v7 = vpack.c.bf16 %v1793_v3, %v1793_v3  ;;  %v236_v8 = vsel %vm211_vm1, %v203_v2, 0.0  ;;  %v198_v22 = vmul.f32 %v187_v44, %v1793_v3  ;;  %v313_v27 = vsel %vm211_vm1, %v281_v19, 0.0 }
  0x93   :  { %v325_v9 = vsel %vm211_vm1, %v285_v4, 0.0  ;;  %v248_v10 = vsel %vm211_vm1, %v207_v5, 0.0  ;;  %v711_v16 = vunpack.c.l.b16 %v681_v6  ;;  %v215_v29 = vsel %vm211_vm1, %v196_v23, 0.0 }
  0x94   :  { %249 = vadd.xlane.f32.xlu2 %v248_v10  ;;  %237 = vadd.xlane.f32.xlu0 %v236_v8  ;;  %v713_v14 = vunpack.c.l.b16 %v683_v7  ;;  %v221_v28 = vsel %vm211_vm1, %v198_v22, 0.0  ;;  %v274_v34 = vmul.f32 %v1770_v45, %v99_v1  ;;  %v692_v63 = vpack.c.bf16 %v1789_v0, %v1789_v0 }
  0x95   :  { %326 = vadd.xlane.f32.xlu1 %v325_v9  ;;  %v714_v25 = vpack.c.b16 %v711_v16, %v710_v21  ;;  %v188_v4 = vperm.slane %v184_v46, 0  ;;  %v804_v10 = vunpack.c.l.b16 %v688_v42 }
  0x96   :  { %v715_v15 = vpack.c.b16 %v713_v14, %v712_v13  ;;  %v292_v39 = vsel %vm211_vm1, %v274_v34, 0.0  ;;  %v851_v0 = vunpack.c.l.b16 %v692_v63 }
  0x97   :  { %v1806_v18 = vpop.f32.mrf.mxu2 }
  0x98   :  { %v174_v20 = vpop.f32.mrf.mxu3  ;;  %730 = vmatpush.bf16.msrb.mxu0 %v715_v15  ;;  %v689_v47 = vpack.c.bf16 %v1806_v18, %v1806_v18  ;;  %v204_v50 = vmul.f32 %v1781_v58, %v1806_v18  ;;  %v282_v14 = vmul.f32 %v1804_v11, %v1806_v18 }
  0x99   :  { %v1811_v24 = vpop.f32.mrf.mxu1  ;;  %v208_v32 = vmul.f32 %v1785_v60, %v174_v20  ;;  %v286_v44 = vmul.f32 %v1783_v59, %v174_v20  ;;  %v693_v52 = vpack.c.bf16 %v174_v20, %v174_v20 }
  0x9a   :  { %v277_v30 = vmul.f32 %v1813_v26, %v1811_v24  ;;  %v239_v5 = vsel %vm211_vm1, %v204_v50, 0.0  ;;  %v805_v7 = vunpack.c.l.b16 %v689_v47  ;;  %v199_v12 = vmul.f32 %v188_v4, %v1811_v24 }
  0x9b   :  { %v251_v37 = vsel %vm211_vm1, %v208_v32, 0.0  ;;  %v328_v1 = vsel %vm211_vm1, %v286_v44, 0.0  ;;  %v852_v9 = vunpack.c.l.b16 %v693_v52  ;;  %v684_v19 = vpack.c.bf16 %v1811_v24, %v1811_v24 }
  0x9c   :  { %731 = vmatpush.bf16.msrb.mxu0 %v714_v25  ;;  %314 = vadd.xlane.f32.xlu2 %v313_v27  ;;  %v301_v36 = vsel %vm211_vm1, %v277_v30, 0.0  ;;  %v808_v13 = vpack.c.b16 %v805_v7, %v804_v10  ;;  %v224_v23 = vsel %vm211_vm1, %v199_v12, 0.0  ;;  %v316_v18 = vsel %vm211_vm1, %v282_v14, 0.0 }
  0x9d   :  { %222 = vadd.xlane.f32.xlu0 %v221_v28  ;;  %216 = vadd.xlane.f32.xlu1 %v215_v29  ;;  %v855_v17 = vpack.c.b16 %v852_v9, %v851_v0  ;;  %v757_v24 = vunpack.c.l.b16 %v684_v19 }
  0x9f   :  { %v1820_v31 = vpop.f32.mrf.mxu2 }
  0xa0   :  { %v1823_v33 = vpop.f32.mrf.mxu3  ;;  %v690_v38 = vpack.c.bf16 %v1820_v31, %v1820_v31  ;;  %v205_v41 = vmul.f32 %v1781_v58, %v1820_v31 }
  0xa1   :  { %v1826_v35 = vpop.f32.mrf.mxu1  ;;  %v694_v40 = vpack.c.bf16 %v1823_v33, %v1823_v33  ;;  %v209_v30 = vmul.f32 %v1785_v60, %v1823_v33  ;;  %v287_v47 = vmul.f32 %v1783_v59, %v1823_v33 }
  0xa2   :  { %v806_v51 = vunpack.c.l.b16 %v690_v38  ;;  %v242_v57 = vsel %vm211_vm1, %v205_v41, 0.0  ;;  %v685_v20 = vpack.c.bf16 %v1826_v35, %v1826_v35 }
  0xa3   :  { %v853_v56 = vunpack.c.l.b16 %v694_v40  ;;  %v200_v40 = vmul.f32 %v188_v4, %v1826_v35 }
  0xa4   :  { %252 = vadd.xlane.f32.xlu2 %v251_v37  ;;  %v758_v28 = vunpack.c.l.b16 %v685_v20  ;;  %v254_v37 = vsel %vm211_vm1, %v209_v30, 0.0  ;;  %v1940_v20 = vld [vmem:[%s2270_s5 + $0x8] sm:$0xff] }
  0xa5   :  { %293 = vadd.xlane.f32.xlu0 %v292_v39  ;;  %302 = vadd.xlane.f32.xlu1 %v301_v36  ;;  %v278_v39 = vmul.f32 %v1813_v26, %v1826_v35  ;;  %v331_v35 = vsel %vm211_vm1, %v287_v47, 0.0 }
  0xa6   :  { %v761_v36 = vpack.c.b16 %v758_v28, %v757_v24 }
  0xa7   :  { %v1837_v43 = vpop.f32.mrf.mxu2  ;;  %v304_v44 = vsel %vm211_vm1, %v278_v39, 0.0 }
  0xa8   :  { %v691_v48 = vpack.c.bf16 %v1837_v43, %v1837_v43  ;;  %v1845_v49 = vpop.f32.mrf.mxu3  ;;  %v206_v15 = vmul.f32 %v1781_v58, %v1837_v43  ;;  %v284_v50 = vmul.f32 %v1804_v11, %v1837_v43  ;;  %v295_v43 = vsel %vm211_vm1, %v1776_v54, 0.0 }
  0xa9   :  { %v695_v53 = vpack.c.bf16 %v1845_v49, %v1845_v49  ;;  %v1851_v55 = vpop.f32.mrf.mxu1  ;;  %v210_v32 = vmul.f32 %v1785_v60, %v1845_v49  ;;  %v227_v60 = vsel %vm211_vm1, %v200_v40, 0.0  ;;  %v288_v33 = vmul.f32 %v1783_v59, %v1845_v49 }
  0xaa   :  { %v807_v62 = vunpack.c.l.b16 %v691_v48  ;;  %v686_v61 = vpack.c.bf16 %v1851_v55, %v1851_v55  ;;  %v245_v58 = vsel %vm211_vm1, %v206_v15, 0.0  ;;  %v201_v27 = vmul.f32 %v188_v4, %v1851_v55 }
  0xab   :  { %v854_v2 = vunpack.c.l.b16 %v695_v53  ;;  %v257_v38 = vsel %vm211_vm1, %v210_v32, 0.0  ;;  %v283_v48 = vmul.f32 %v1804_v11, %v1820_v31  ;;  %v322_v52 = vsel %vm211_vm1, %v284_v50, 0.0 }
  0xac   :  { %329 = vadd.xlane.f32.xlu2 %v328_v1  ;;  %v809_v6 = vpack.c.b16 %v807_v62, %v806_v51  ;;  %v759_v21 = vunpack.c.l.b16 %v686_v61  ;;  %v230_v34 = vsel %vm211_vm1, %v201_v27, 0.0  ;;  %v276_v53 = vmul.f32 %v1770_v45, %v1793_v3 }
  0xad   :  { %240 = vadd.xlane.f32.xlu0 %v239_v5  ;;  %243 = vadd.xlane.f32.xlu1 %v242_v57  ;;  %v856_v8 = vpack.c.b16 %v854_v2, %v853_v56  ;;  %v319_v51 = vsel %vm211_vm1, %v283_v48, 0.0  ;;  %v334_v11 = vsel %vm211_vm1, %v288_v33, 0.0  ;;  %v279_v56 = vmul.f32 %v1813_v26, %v1851_v55 }
  0xae   :  { %824 = vmatpush.bf16.msrb.mxu2 %v809_v6  ;;  %v298_v31 = vsel %vm211_vm1, %v276_v53, 0.0  ;;  %v353_v62 = vlaneseq  ;;  %v1965_v53 = vld [vmem:[%s2270_s5] sm:$0xff] }
  0xaf   :  { %871 = vmatpush.bf16.msrb.mxu3 %v856_v8  ;;  %v307_v45 = vsel %vm211_vm1, %v279_v56, 0.0 }
  0xb0   :  { %v1914_v2 = vand.u32 127, %v353_v62 }
  0xb1   :  { %v129_v16 = vpop.f32.mrf.mxu1 }
  0xb2   :  { %v687_v22 = vpack.c.bf16 %v129_v16, %v129_v16  ;;  %825 = vmatpush.bf16.msrb.mxu2 %v808_v13  ;;  %v202_v41 = vmul.f32 %v188_v4, %v129_v16  ;;  %v280_v42 = vmul.f32 %v1813_v26, %v129_v16  ;;  %v1917_v55 = vadd.s32 4294967288, %v1914_v2 }
  0xb3   :  { %872 = vmatpush.bf16.msrb.mxu3 %v855_v17  ;;  %v1920_v26 = vadd.s32 4294967280, %v1914_v2  ;;  %v1925_v9 = vadd.s32 4294967272, %v1914_v2 }
  0xb4   :  { %v760_v25 = vunpack.c.l.b16 %v687_v22  ;;  %225 = vadd.xlane.f32.xlu2 %v224_v23  ;;  %v233_v46 = vsel %vm211_vm1, %v202_v41, 0.0  ;;  %v310_v3 = vsel %vm211_vm1, %v280_v42, 0.0 }
  0xb5   :  { %317 = vadd.xlane.f32.xlu0 %v316_v18  ;;  %246 = vadd.xlane.f32.xlu1 %v245_v58 }
  0xb6   :  { %v762_v29 = vpack.c.b16 %v760_v25, %v759_v21 }
  0xb8   :  { %777 = vmatpush.bf16.msra.mxu1 %v762_v29 }
  0xbc   :  { %778 = vmatpush.bf16.msra.mxu1 %v761_v36  ;;  %231 = vadd.xlane.f32.xlu2 %v230_v34 }
  0xbd   :  { %255 = vadd.xlane.f32.xlu0 %v254_v37  ;;  %258 = vadd.xlane.f32.xlu1 %v257_v38 }
  0xc4   :  { %305 = vadd.xlane.f32.xlu2 %v304_v44 }
  0xc5   :  { %228 = vadd.xlane.f32.xlu0 %v227_v60  ;;  %234 = vadd.xlane.f32.xlu1 %v233_v46 }
  0xcc   :  { %332 = vadd.xlane.f32.xlu2 %v331_v35 }
  0xcd   :  { %320 = vadd.xlane.f32.xlu0 %v319_v51  ;;  %323 = vadd.xlane.f32.xlu1 %v322_v52 }
  0xd4   :  { %299 = vadd.xlane.f32.xlu2 %v298_v31 }
  0xd5   :  { %335 = vadd.xlane.f32.xlu0 %v334_v11  ;;  %296 = vadd.xlane.f32.xlu1 %v295_v43 }
  0xdd   :  { %308 = vadd.xlane.f32.xlu0 %v307_v45  ;;  %311 = vadd.xlane.f32.xlu1 %v310_v3 }
  0xff   :  { %v291_v59 = vpop.xlane.xlu2 %290  ;;  %v214_v49 = vpop.xlane.xlu0 %213 }
 0x100   :  { %v220_v57 = vpop.xlane.xlu1 %219  ;;  %v355_v7 = vperm.slane %v214_v49, %v1914_v2 }
 0x101   :  { %v361_v61 = vperm.slane %v220_v57, %v1920_v26 }
 0x107   :  { %v1910_v63 = vpop.xlane.xlu2 %249  ;;  %v238_v54 = vpop.xlane.xlu0 %237 }
 0x108   :  { %v1912_v1 = vpop.xlane.xlu1 %326  ;;  %v375_v24 = vperm.slane %v238_v54, %v1914_v2  ;;  %v382_v50 = vperm.slane %v1910_v63, %v1914_v2 }
 0x10f   :  { %v315_v4 = vpop.xlane.xlu2 %314 }
 0x110   :  { %v223_v5 = vpop.xlane.xlu0 %222  ;;  %v217_v6 = vpop.xlane.xlu1 %216 }
 0x111   :  { %v357_v8 = vperm.slane %v217_v6, %v1917_v55  ;;  %v365_v12 = vperm.slane %v223_v5, %v1925_v9 }
 0x113   :  { %v359_v10 = vsel %vm358_vm2, %v357_v8, %v355_v7 }
 0x114   :  { %v363_v0 = vsel %vm362_vm3, %v361_v61, %v359_v10 }
 0x115   :  { %v1932_v15 = vsel %vm366_vm4, %v365_v12, %v363_v0 }
 0x116   :  { %v423_v39 = vadd.f32 %v1932_v15, %v291_v59 }
 0x117   :  { %v253_v13 = vpop.xlane.xlu2 %252 }
 0x118   :  { %v294_v14 = vpop.xlane.xlu0 %293  ;;  %v1934_v16 = vpop.xlane.xlu1 %302  ;;  %v383_v44 = vperm.slane %v253_v13, %v1917_v55  ;;  %v455_v48 = vmul.f32 0.2, %v423_v39  ;;  %vm439_vm9 = vcmp.ge.f32.partialorder %v423_v39, 0.0 }
 0x119   :  { %v424_v17 = vadd.f32 %v1932_v15, %v294_v14 }
 0x11a   :  { %v384_v42 = vsel %vm358_vm2, %v383_v44, %v382_v50  ;;  %v471_v49 = vsel %vm439_vm9, %v423_v39, %v455_v48  ;;  %v2019_v39 = vld [vmem:[%s2270_s5 + $0x18] sm:$0xff] }
 0x11b   :  { %vm440_vm5 = vcmp.ge.f32.partialorder %v424_v17, 0.0  ;;  %v456_v19 = vmul.f32 0.2, %v424_v17  ;;  %v1988_v54 = vadd.f32 %v471_v49, %v1965_v53 }
 0x11d   :  { %v472_v21 = vsel %vm440_vm5, %v424_v17, %v456_v19 }
 0x11e   :  { %v1943_v22 = vadd.f32 %v472_v21, %v1940_v20  ;;  %v504_v21 = vsel %vm503_vm6, %v1988_v54, -inf }
 0x11f   :  { %v330_v23 = vpop.xlane.xlu2 %329 }
 0x120   :  { %v241_v25 = vpop.xlane.xlu0 %240  ;;  %v244_v18 = vpop.xlane.xlu1 %243  ;;  %v507_v58 = vsel %vm503_vm6, %v1943_v22, -inf }
 0x121   :  { %508 = vmax.xlane.f32.xlu1 %v507_v58  ;;  %v376_v27 = vperm.slane %v241_v25, %v1917_v55  ;;  %v378_v28 = vperm.slane %v244_v18, %v1920_v26 }
 0x123   :  { %v377_v29 = vsel %vm358_vm2, %v376_v27, %v375_v24 }
 0x124   :  { %v379_v37 = vsel %vm362_vm3, %v378_v28, %v377_v29 }
 0x127   :  { %v226_v30 = vpop.xlane.xlu2 %225 }
 0x128   :  { %v318_v32 = vpop.xlane.xlu0 %317  ;;  %v247_v34 = vpop.xlane.xlu1 %246  ;;  %v368_v61 = vperm.slane %v226_v30, %v1914_v2 }
 0x129   :  { %v380_v36 = vperm.slane %v247_v34, %v1925_v9 }
 0x12b   :  { %v1954_v38 = vsel %vm366_vm4, %v380_v36, %v379_v37  ;;  %v43_v37 = vld [vmem:[%s2270_s5 + $0x10] sm:$0xff] }
 0x12c   :  { %v432_v40 = vadd.f32 %v1954_v38, %v318_v32  ;;  %v431_v41 = vadd.f32 %v1954_v38, %v315_v4 }
 0x12e   :  { %vm448_vm7 = vcmp.ge.f32.partialorder %v432_v40, 0.0  ;;  %v464_v60 = vmul.f32 0.2, %v432_v40  ;;  %vm447_vm8 = vcmp.ge.f32.partialorder %v431_v41, 0.0  ;;  %v463_v46 = vmul.f32 0.2, %v431_v41 }
 0x12f   :  { %v232_v47 = vpop.xlane.xlu2 %231 }
 0x130   :  { %v256_v35 = vpop.xlane.xlu0 %255  ;;  %v259_v51 = vpop.xlane.xlu1 %258  ;;  %v480_v52 = vsel %vm448_vm7, %v432_v40, %v464_v60  ;;  %v479_v33 = vsel %vm447_vm8, %v431_v41, %v463_v46  ;;  %v371_v13 = vperm.slane %v232_v47, %v1920_v26  ;;  %vm1065_vm8 = vcmask 1043456  }
 0x131   :  { %v385_v31 = vperm.slane %v256_v35, %v1920_v26  ;;  %v387_v11 = vperm.slane %v259_v51, %v1925_v9  ;;  %v1970_v43 = vadd.f32 %v480_v52, %v1940_v20  ;;  %v1973_v56 = vadd.f32 %v479_v33, %v1965_v53 }
 0x133   :  { %v386_v45 = vsel %vm362_vm3, %v385_v31, %v384_v42  ;;  %v531_v3 = vsel %vm503_vm6, %v1970_v43, -inf  ;;  %v528_v59 = vsel %vm503_vm6, %v1973_v56, -inf }
 0x134   :  { %v1982_v57 = vsel %vm366_vm4, %v387_v11, %v386_v45  ;;  %532 = vmax.xlane.f32.xlu0 %v531_v3  ;;  %529 = vmax.xlane.f32.xlu2 %v528_v59 }
 0x135   :  { %v436_v62 = vadd.f32 %v1982_v57, %v330_v23  ;;  %v435_v63 = vadd.f32 %v1982_v57, %v1912_v1 }
 0x137   :  { %v306_v4 = vpop.xlane.xlu2 %305  ;;  %vm452_vm10 = vcmp.ge.f32.partialorder %v436_v62, 0.0  ;;  %v468_v5 = vmul.f32 0.2, %v436_v62  ;;  %vm451_vm11 = vcmp.ge.f32.partialorder %v435_v63, 0.0  ;;  %v467_v6 = vmul.f32 0.2, %v435_v63 }
 0x138   :  { %v229_v7 = vpop.xlane.xlu0 %228  ;;  %v235_v8 = vpop.xlane.xlu1 %234 }
 0x139   :  { %v369_v10 = vperm.slane %v229_v7, %v1917_v55  ;;  %v484_v0 = vsel %vm452_vm10, %v436_v62, %v468_v5  ;;  %v483_v12 = vsel %vm451_vm11, %v435_v63, %v467_v6  ;;  %v373_v19 = vperm.slane %v235_v8, %v1925_v9 }
 0x13a   :  { %v1994_v1 = vadd.f32 %v484_v0, %v1940_v20  ;;  %v1997_v14 = vadd.f32 %v483_v12, %v1965_v53 }
 0x13b   :  { %v370_v17 = vsel %vm358_vm2, %v369_v10, %v368_v61 }
 0x13c   :  { %v372_v23 = vsel %vm362_vm3, %v371_v13, %v370_v17  ;;  %505 = vmax.xlane.f32.xlu0 %v504_v21  ;;  %v543_v55 = vsel %vm503_vm6, %v1994_v1, -inf  ;;  %v540_v26 = vsel %vm503_vm6, %v1997_v14, -inf }
 0x13d   :  { %v374_v25 = vsel %vm366_vm4, %v373_v19, %v372_v23  ;;  %544 = vmax.xlane.f32.xlu2 %v543_v55  ;;  %541 = vmax.xlane.f32.xlu1 %v540_v26 }
 0x13e   :  { %v428_v18 = vadd.f32 %v374_v25, %v306_v4  ;;  %v427_v32 = vadd.f32 %v374_v25, %v1934_v16 }
 0x13f   :  { %v333_v58 = vpop.xlane.xlu2 %332 }
 0x140   :  { %v437_v9 = vadd.f32 %v1982_v57, %v333_v58  ;;  %v321_v27 = vpop.xlane.xlu0 %320  ;;  %v324_v24 = vpop.xlane.xlu1 %323  ;;  %vm444_vm12 = vcmp.ge.f32.partialorder %v428_v18, 0.0  ;;  %v460_v28 = vmul.f32 0.2, %v428_v18  ;;  %v459_v60 = vmul.f32 0.2, %v427_v32 }
 0x141   :  { %v433_v29 = vadd.f32 %v1954_v38, %v321_v27  ;;  %v434_v30 = vadd.f32 %v1954_v38, %v324_v24  ;;  %vm443_vm0 = vcmp.ge.f32.partialorder %v427_v32, 0.0 }
 0x142   :  { %v469_v34 = vmul.f32 0.2, %v437_v9  ;;  %v476_v36 = vsel %vm444_vm12, %v428_v18, %v460_v28  ;;  %vm453_vm15 = vcmp.ge.f32.partialorder %v437_v9, 0.0  ;;  %v475_v45 = vsel %vm443_vm0, %v427_v32, %v459_v60 }
 0x143   :  { %vm449_vm13 = vcmp.ge.f32.partialorder %v433_v29, 0.0  ;;  %v465_v40 = vmul.f32 0.2, %v433_v29  ;;  %vm450_vm14 = vcmp.ge.f32.partialorder %v434_v30, 0.0  ;;  %v466_v41 = vmul.f32 0.2, %v434_v30 }
 0x144   :  { %v2022_v38 = vadd.f32 %v476_v36, %v1940_v20  ;;  %v485_v35 = vsel %vm453_vm15, %v437_v9, %v469_v34  ;;  %v2041_v62 = vadd.f32 %v475_v45, %v1965_v53 }
 0x145   :  { %v481_v16 = vsel %vm449_vm13, %v433_v29, %v465_v40  ;;  %v482_v44 = vsel %vm450_vm14, %v434_v30, %v466_v41  ;;  %v2038_v3 = vadd.f32 %v485_v35, %v43_v37 }
 0x146   :  { %v519_v46 = vsel %vm503_vm6, %v2022_v38, -inf  ;;  %v2026_v47 = vadd.f32 %v481_v16, %v43_v37  ;;  %v2029_v48 = vadd.f32 %v482_v44, %v2019_v39  ;;  %v516_v53 = vsel %vm503_vm6, %v2041_v62, -inf }
 0x147   :  { %520 = vmax.xlane.f32.xlu0 %v519_v46  ;;  %v300_v50 = vpop.xlane.xlu2 %299 }
 0x148   :  { %v426_v51 = vadd.f32 %v1932_v15, %v300_v50  ;;  %v336_v52 = vpop.xlane.xlu0 %335  ;;  %v297_v20 = vpop.xlane.xlu1 %296  ;;  %v534_v33 = vsel %vm503_vm6, %v2026_v47, -inf  ;;  %v537_v31 = vsel %vm503_vm6, %v2029_v48, -inf }
 0x149   :  { %v438_v11 = vadd.f32 %v1982_v57, %v336_v52  ;;  %v425_v42 = vadd.f32 %v1932_v15, %v297_v20  ;;  %535 = vmax.xlane.f32.xlu1 %v534_v33  ;;  %538 = vmax.xlane.f32.xlu2 %v537_v31  ;;  %v546_v57 = vsel %vm503_vm6, %v2038_v3, -inf }
 0x14a   :  { %v458_v59 = vmul.f32 0.2, %v426_v51  ;;  %vm442_vm3 = vcmp.ge.f32.partialorder %v426_v51, 0.0 }
 0x14b   :  { %vm454_vm2 = vcmp.ge.f32.partialorder %v438_v11, 0.0  ;;  %v470_v49 = vmul.f32 0.2, %v438_v11  ;;  %v457_v63 = vmul.f32 0.2, %v425_v42  ;;  %vm441_vm4 = vcmp.ge.f32.partialorder %v425_v42, 0.0 }
 0x14c   :  { %v474_v5 = vsel %vm442_vm3, %v426_v51, %v458_v59 }
 0x14d   :  { %v486_v4 = vsel %vm454_vm2, %v438_v11, %v470_v49  ;;  %v473_v0 = vsel %vm441_vm4, %v425_v42, %v457_v63  ;;  %v2053_v12 = vadd.f32 %v474_v5, %v2019_v39 }
 0x14e   :  { %v2046_v15 = vadd.f32 %v486_v4, %v2019_v39  ;;  %v2055_v17 = vadd.f32 %v473_v0, %v43_v37 }
 0x14f   :  { %547 = vmax.xlane.f32.xlu0 %v546_v57  ;;  %v513_v23 = vsel %vm503_vm6, %v2053_v12, -inf }
 0x150   :  { %v309_v6 = vpop.xlane.xlu0 %308  ;;  %v312_v7 = vpop.xlane.xlu1 %311  ;;  %v549_v8 = vsel %vm503_vm6, %v2046_v15, -inf }
 0x151   :  { %v429_v61 = vadd.f32 %v374_v25, %v309_v6  ;;  %v430_v10 = vadd.f32 %v374_v25, %v312_v7  ;;  %550 = vmax.xlane.f32.xlu1 %v549_v8  ;;  %517 = vmax.xlane.f32.xlu2 %v516_v53  ;;  %v510_v25 = vsel %vm503_vm6, %v2055_v17, -inf }
 0x153   :  { %vm445_vm5 = vcmp.ge.f32.partialorder %v429_v61, 0.0  ;;  %v461_v13 = vmul.f32 0.2, %v429_v61  ;;  %v462_v19 = vmul.f32 0.2, %v430_v10  ;;  %vm446_vm7 = vcmp.ge.f32.partialorder %v430_v10, 0.0 }
 0x155   :  { %v477_v21 = vsel %vm445_vm5, %v429_v61, %v461_v13  ;;  %v478_v18 = vsel %vm446_vm7, %v430_v10, %v462_v19 }
 0x156   :  { %v2059_v55 = vadd.f32 %v477_v21, %v43_v37  ;;  %v2066_v58 = vadd.f32 %v478_v18, %v2019_v39 }
 0x157   :  { %514 = vmax.xlane.f32.xlu0 %v513_v23 }
 0x158   :  { %v522_v26 = vsel %vm503_vm6, %v2059_v55, -inf  ;;  %v525_v9 = vsel %vm503_vm6, %v2066_v58, -inf }
 0x159   :  { %523 = vmax.xlane.f32.xlu1 %v522_v26  ;;  %511 = vmax.xlane.f32.xlu2 %v510_v25 }
 0x161   :  { %526 = vmax.xlane.f32.xlu2 %v525_v9 }
 0x194   :  { %v509_v27 = vpop.xlane.xlu1 %508 }
 0x195   :  { %v553_v24 = vsub.f32 %v1943_v22, %v509_v27 }
 0x197   :  { %v570_v28 = vmul.f32 1.442695, %v553_v24 }
 0x199   :  { %1501 = vpow2.f32 %v570_v28 }
 0x19f   :  { %v1502_v29 = vpop.eup %1501 }
 0x1a0   :  { %v603_v30 = vsel %vm503_vm6, %v1502_v29, 0.0  ;;  %v665_v11 = vpack.c.bf16 %v1502_v29, %v1502_v29 }
 0x1a1   :  { %604 = vadd.xlane.f32.xlu2 %v603_v30 }
 0x1a2   :  { %v701_v57 = vunpack.c.l.b16 %v665_v11 }
 0x1a7   :  { %v533_v32 = vpop.xlane.xlu0 %532  ;;  %v530_v34 = vpop.xlane.xlu2 %529 }
 0x1a8   :  { %v561_v36 = vsub.f32 %v1970_v43, %v533_v32  ;;  %v560_v37 = vsub.f32 %v1973_v56, %v530_v34 }
 0x1aa   :  { %v586_v39 = vmul.f32 1.442695, %v561_v36  ;;  %v584_v40 = vmul.f32 1.442695, %v560_v37 }
 0x1ac   :  { %1503 = vpow2.f32 %v586_v39 }
 0x1ad   :  { %1505 = vpow2.f32 %v584_v40 }
 0x1af   :  { %v506_v41 = vpop.xlane.xlu0 %505 }
 0x1b0   :  { %v552_v16 = vsub.f32 %v1988_v54, %v506_v41  ;;  %v545_v22 = vpop.xlane.xlu2 %544  ;;  %v542_v44 = vpop.xlane.xlu1 %541 }
 0x1b1   :  { %v565_v60 = vsub.f32 %v1994_v1, %v545_v22  ;;  %v564_v46 = vsub.f32 %v1997_v14, %v542_v44 }
 0x1b2   :  { %v1504_v50 = vpop.eup %1503  ;;  %v568_v35 = vmul.f32 1.442695, %v552_v16 }
 0x1b3   :  { %v1506_v51 = vpop.eup %1505  ;;  %v673_v52 = vpack.c.bf16 %v1504_v50, %v1504_v50  ;;  %v594_v43 = vmul.f32 1.442695, %v565_v60  ;;  %v592_v20 = vmul.f32 1.442695, %v564_v46 }
 0x1b4   :  { %v672_v56 = vpack.c.bf16 %v1506_v51, %v1506_v51  ;;  %1507 = vpow2.f32 %v568_v35  ;;  %v624_v33 = vsel %vm503_vm6, %v1506_v51, 0.0 }
 0x1b5   :  { %v795_v31 = vunpack.c.l.b16 %v673_v52  ;;  %1509 = vpow2.f32 %v594_v43  ;;  %625 = vadd.xlane.f32.xlu0 %v624_v33 }
 0x1b6   :  { %v794_v54 = vunpack.c.l.b16 %v672_v56  ;;  %1511 = vpow2.f32 %v592_v20 }
 0x1b8   :  { %v798_v42 = vpack.c.b16 %v795_v31, %v794_v54 }
 0x1ba   :  { %v1508_v1 = vpop.eup %1507  ;;  %1463 = vmatmul.msk.bf16.vlgmr.msrb.gmra.mxu2 %vm503_vm6, %v798_v42  ;;  %v521_v14 = vpop.xlane.xlu0 %520 }
 0x1bb   :  { %v1510_v45 = vpop.eup %1509  ;;  %v664_v59 = vpack.c.bf16 %v1508_v1, %v1508_v1  ;;  %v557_v49 = vsub.f32 %v2022_v38, %v521_v14  ;;  %v600_v63 = vsel %vm503_vm6, %v1508_v1, 0.0 }
 0x1bc   :  { %v1512_v4 = vpop.eup %1511  ;;  %v677_v5 = vpack.c.bf16 %v1510_v45, %v1510_v45  ;;  %601 = vadd.xlane.f32.xlu1 %v600_v63  ;;  %v539_v6 = vpop.xlane.xlu2 %538  ;;  %v639_v8 = vsel %vm503_vm6, %v1510_v45, 0.0 }
 0x1bd   :  { %v536_v7 = vpop.xlane.xlu1 %535  ;;  %v700_v53 = vunpack.c.l.b16 %v664_v59  ;;  %v676_v61 = vpack.c.bf16 %v1512_v4, %v1512_v4  ;;  %v578_v10 = vmul.f32 1.442695, %v557_v49  ;;  %v563_v0 = vsub.f32 %v2029_v48, %v539_v6  ;;  %640 = vadd.xlane.f32.xlu0 %v639_v8 }
 0x1be   :  { %v842_v13 = vunpack.c.l.b16 %v677_v5  ;;  %v562_v19 = vsub.f32 %v2026_v47, %v536_v7  ;;  %v636_v38 = vsel %vm503_vm6, %v1512_v4, 0.0  ;;  %v627_v47 = vsel %vm503_vm6, %v1504_v50, 0.0 }
 0x1bf   :  { %v841_v21 = vunpack.c.l.b16 %v676_v61  ;;  %v590_v23 = vmul.f32 1.442695, %v563_v0  ;;  %637 = vadd.xlane.f32.xlu2 %v636_v38  ;;  %v704_v26 = vpack.c.b16 %v701_v57, %v700_v53  ;;  %1513 = vpow2.f32 %v578_v10 }
 0x1c0   :  { %v588_v25 = vmul.f32 1.442695, %v562_v19 }
 0x1c1   :  { %1515 = vpow2.f32 %v590_v23  ;;  %1459 = vmatmul.msk.bf16.vlgmr.msrb.gmra.mxu0 %vm503_vm6, %v704_v26  ;;  %v845_v18 = vpack.c.b16 %v842_v13, %v841_v21 }
 0x1c2   :  { %1517 = vpow2.f32 %v588_v25  ;;  %v548_v9 = vpop.xlane.xlu0 %547 }
 0x1c3   :  { %v566_v48 = vsub.f32 %v2038_v3, %v548_v9  ;;  %1465 = vmatmul.msk.bf16.vlgmr.msrb.gmra.mxu3 %vm503_vm6, %v845_v18 }
 0x1c4   :  { %628 = vadd.xlane.f32.xlu1 %v627_v47  ;;  %v518_v27 = vpop.xlane.xlu2 %517 }
 0x1c5   :  { %v551_v24 = vpop.xlane.xlu1 %550  ;;  %v596_v28 = vmul.f32 1.442695, %v566_v48  ;;  %v556_v29 = vsub.f32 %v2041_v62, %v518_v27  ;;  %v1514_v32 = vpop.eup %1513 }
 0x1c6   :  { %v567_v30 = vsub.f32 %v2046_v15, %v551_v24  ;;  %v615_v44 = vsel %vm503_vm6, %v1514_v32, 0.0  ;;  %v669_v56 = vpack.c.bf16 %v1514_v32, %v1514_v32 }
 0x1c7   :  { %v1516_v34 = vpop.eup %1515  ;;  %1519 = vpow2.f32 %v596_v28  ;;  %v576_v36 = vmul.f32 1.442695, %v556_v29 }
 0x1c8   :  { %v598_v37 = vmul.f32 1.442695, %v567_v30  ;;  %v1518_v39 = vpop.eup %1517  ;;  %v633_v3 = vsel %vm503_vm6, %v1516_v34, 0.0  ;;  %v675_v40 = vpack.c.bf16 %v1516_v34, %v1516_v34  ;;  %v748_v45 = vunpack.c.l.b16 %v669_v56 }
 0x1c9   :  { %1521 = vpow2.f32 %v576_v36  ;;  %634 = vadd.xlane.f32.xlu0 %v633_v3  ;;  %v630_v41 = vsel %vm503_vm6, %v1518_v39, 0.0  ;;  %v674_v16 = vpack.c.bf16 %v1518_v39, %v1518_v39  ;;  %v1043_v3 = vld [vmem:[%s2271_s6 + $0x10] sm:$0xff] }
 0x1ca   :  { %1523 = vpow2.f32 %v598_v37  ;;  %v515_v22 = vpop.xlane.xlu0 %514  ;;  %631 = vadd.xlane.f32.xlu2 %v630_v41  ;;  %v797_v62 = vunpack.c.l.b16 %v675_v40  ;;  %v2115_v37 = vld [vmem:[%s2269_s4] sm:$0xf]  ;;  %v1047_v41 = vpack.c.bf16 %v1043_v3, %v1043_v3 }
 0x1cb   :  { %v555_v15 = vsub.f32 %v2053_v12, %v515_v22  ;;  %v796_v60 = vunpack.c.l.b16 %v674_v16  ;;  %v919_v40 = vrot.slane %v2115_v37, 2  ;;  %v1041_v16 = vld [vmem:[%s2271_s6] sm:$0xff] }
 0x1cc   :  { %616 = vadd.xlane.f32.xlu1 %v615_v44  ;;  %v512_v46 = vpop.xlane.xlu2 %511 }
 0x1cd   :  { %v524_v50 = vpop.xlane.xlu1 %523  ;;  %v1520_v35 = vpop.eup %1519  ;;  %v574_v51 = vmul.f32 1.442695, %v555_v15  ;;  %v554_v52 = vsub.f32 %v2055_v17, %v512_v46  ;;  %v799_v20 = vpack.c.b16 %v797_v62, %v796_v60  ;;  %v1143_v62 = vsel %vm1065_vm8, %v1047_v41, 0 }
 0x1ce   :  { %v558_v43 = vsub.f32 %v2059_v55, %v524_v50  ;;  %v678_v12 = vpack.c.bf16 %v1520_v35, %v1520_v35  ;;  %v642_v59 = vsel %vm503_vm6, %v1520_v35, 0.0  ;;  %v1045_v15 = vpack.c.bf16 %v1041_v16, %v1041_v16  ;;  %1152 = vmatpush.bf16.msra.mxu2 %v1143_v62 }
 0x1cf   :  { %v1522_v33 = vpop.eup %1521  ;;  %1525 = vpow2.f32 %v574_v51  ;;  %v572_v31 = vmul.f32 1.442695, %v554_v52  ;;  %1464 = vmatmul.msk.bf16.gmra.mxu2 %vm503_vm6, %v799_v20  ;;  %v2125_v46 = vperm.slane %v919_v40, 0  ;;  %v2131_v20 = vperm.slane %v2115_v37, 0 }
 0x1d0   :  { %v580_v54 = vmul.f32 1.442695, %v558_v43  ;;  %v1524_v11 = vpop.eup %1523  ;;  %v668_v42 = vpack.c.bf16 %v1522_v33, %v1522_v33  ;;  %v612_v1 = vsel %vm503_vm6, %v1522_v33, 0.0  ;;  %v843_v49 = vunpack.c.l.b16 %v678_v12 }
 0x1d1   :  { %1527 = vpow2.f32 %v572_v31  ;;  %613 = vadd.xlane.f32.xlu0 %v612_v1  ;;  %v645_v14 = vsel %vm503_vm6, %v1524_v11, 0.0  ;;  %v679_v17 = vpack.c.bf16 %v1524_v11, %v1524_v11  ;;  %v1067_v35 = vsel %vm1065_vm8, %v1045_v15, 0 }
 0x1d2   :  { %v747_v55 = vunpack.c.l.b16 %v668_v42  ;;  %1529 = vpow2.f32 %v580_v54  ;;  %646 = vadd.xlane.f32.xlu2 %v645_v14  ;;  %1076 = vmatpush.bf16.msra.mxu0 %v1067_v35  ;;  %v1044_v42 = vld [vmem:[%s2271_s6 + $0x18] sm:$0xff]  ;;  %v920_v14 = vrot.slane %v2115_v37, 3 }
 0x1d3   :  { %v844_v63 = vunpack.c.l.b16 %v679_v17  ;;  %v1048_v17 = vpack.c.bf16 %v1044_v42, %v1044_v42 }
 0x1d4   :  { %v751_v4 = vpack.c.b16 %v748_v45, %v747_v55  ;;  %643 = vadd.xlane.f32.xlu1 %v642_v59  ;;  %v527_v57 = vpop.xlane.xlu2 %526 }
 0x1d5   :  { %v1526_v5 = vpop.eup %1525  ;;  %v559_v6 = vsub.f32 %v2066_v58, %v527_v57  ;;  %v846_v7 = vpack.c.b16 %v844_v63, %v843_v49  ;;  %v1181_v59 = vsel %vm1065_vm8, %v1048_v17, 0  ;;  %v1042_v49 = vld [vmem:[%s2271_s6 + $0x8] sm:$0xff] }
 0x1d6   :  { %1461 = vmatmul.msk.bf16.vlgmr.msra.gmra.mxu1 %vm503_vm6, %v751_v4  ;;  %v667_v8 = vpack.c.bf16 %v1526_v5, %v1526_v5  ;;  %v609_v58 = vsel %vm503_vm6, %v1526_v5, 0.0  ;;  %1190 = vmatpush.bf16.msra.mxu3 %v1181_v59  ;;  %v1046_v5 = vpack.c.bf16 %v1042_v49, %v1042_v49 }
 0x1d7   :  { %v1528_v53 = vpop.eup %1527  ;;  %v582_v61 = vmul.f32 1.442695, %v559_v6  ;;  %1466 = vmatmul.msk.bf16.gmra.mxu3 %vm503_vm6, %v846_v7 }
 0x1d8   :  { %v1530_v10 = vpop.eup %1529  ;;  %v606_v0 = vsel %vm503_vm6, %v1528_v53, 0.0  ;;  %v666_v13 = vpack.c.bf16 %v1528_v53, %v1528_v53  ;;  %v703_v21 = vunpack.c.l.b16 %v667_v8  ;;  %v2146_v8 = vperm.slane %v920_v14, 0 }
 0x1d9   :  { %1531 = vpow2.f32 %v582_v61  ;;  %607 = vadd.xlane.f32.xlu0 %v606_v0  ;;  %v618_v19 = vsel %vm503_vm6, %v1530_v10, 0.0  ;;  %v670_v26 = vpack.c.bf16 %v1530_v10, %v1530_v10 }
 0x1da   :  { %619 = vadd.xlane.f32.xlu2 %v618_v19  ;;  %v702_v38 = vunpack.c.l.b16 %v666_v13  ;;  %v1105_v19 = vsel %vm1065_vm8, %v1046_v5, 0 }
 0x1db   :  { %v749_v48 = vunpack.c.l.b16 %v670_v26  ;;  %1114 = vmatpush.bf16.msrb.mxu1 %v1105_v19 }
 0x1dc   :  { %610 = vadd.xlane.f32.xlu1 %v609_v58  ;;  %v705_v23 = vpack.c.b16 %v703_v21, %v702_v38 }
 0x1de   :  { %1460 = vmatmul.msk.bf16.gmra.mxu0 %vm503_vm6, %v705_v23 }
 0x1df   :  { %v1532_v25 = vpop.eup %1531 }
 0x1e0   :  { %v621_v18 = vsel %vm503_vm6, %v1532_v25, 0.0  ;;  %v671_v9 = vpack.c.bf16 %v1532_v25, %v1532_v25 }
 0x1e1   :  { %622 = vadd.xlane.f32.xlu0 %v621_v18 }
 0x1e2   :  { %v750_v47 = vunpack.c.l.b16 %v671_v9 }
 0x1e4   :  { %v752_v27 = vpack.c.b16 %v750_v47, %v749_v48 }
 0x1e6   :  { %1462 = vmatmul.msk.bf16.gmra.mxu1 %vm503_vm6, %v752_v27 }
 0x214   :  { %v605_v28 = vpop.xlane.xlu2 %604 }
 0x215   :  { %v649_v22 = vmax.f32 %v605_v28, 1e-20 }
 0x228   :  { %v626_v24 = vpop.xlane.xlu0 %625 }
 0x229   :  { %v656_v30 = vmax.f32 %v626_v24, 1e-20 }
 0x22b   :  { %1533 = vrcp.f32 %v656_v30 }
 0x22f   :  { %v602_v29 = vpop.xlane.xlu1 %601 }
 0x230   :  { %v648_v32 = vmax.f32 %v602_v29, 1e-20  ;;  %v2110_v34 = vpop.xlane.xlu0 %640 }
 0x231   :  { %v1534_v51 = vpop.eup %1533  ;;  %v661_v4 = vmax.f32 %v2110_v34, 1e-20 }
 0x232   :  { %v638_v36 = vpop.xlane.xlu2 %637  ;;  %1535 = vrcp.f32 %v648_v32 }
 0x233   :  { %v660_v60 = vmax.f32 %v638_v36, 1e-20  ;;  %1537 = vrcp.f32 %v649_v22 }
 0x237   :  { %v629_v39 = vpop.xlane.xlu1 %628 }
 0x238   :  { %v657_v44 = vmax.f32 %v629_v39, 1e-20  ;;  %v1536_v56 = vpop.eup %1535  ;;  %v918_v39 = vrot.slane %v2115_v37, 1 }
 0x239   :  { %v1538_v63 = vpop.eup %1537 }
 0x23a   :  { %1539 = vrcp.f32 %v657_v44 }
 0x23b   :  { %1541 = vrcp.f32 %v660_v60 }
 0x23c   :  { %v2127_v50 = vpop.xlane.xlu0 %634 }
 0x23d   :  { %v827_v52 = vpop.f32.mrf.mxu2  ;;  %v632_v43 = vpop.xlane.xlu2 %631  ;;  %v659_v29 = vmax.f32 %v2127_v50, 1e-20 }
 0x23e   :  { %v908_v33 = vmul.f32 %v1534_v51, %v827_v52  ;;  %v733_v31 = vpop.f32.mrf.mxu0  ;;  %v658_v61 = vmax.f32 %v632_v43, 1e-20  ;;  %v2166_v51 = vperm.slane %v918_v39, 0 }
 0x23f   :  { %v900_v54 = vmul.f32 %v1536_v56, %v733_v31  ;;  %v2133_v12 = vpop.xlane.xlu1 %616 }
 0x240   :  { %v937_v11 = vadd.f32 %v2125_v46, %v908_v33  ;;  %v1540_v6 = vpop.eup %1539  ;;  %v653_v34 = vmax.f32 %v2133_v12, 1e-20 }
 0x241   :  { %v929_v1 = vadd.f32 %v2131_v20, %v900_v54  ;;  %v1542_v53 = vpop.eup %1541 }
 0x242   :  { %v977_v45 = vmul.f32 1.442695, %v937_v11  ;;  %vm953_vm9 = vcmp.gt.f32.partialorder %v937_v11, 0.0 }
 0x243   :  { %v961_v55 = vmul.f32 1.442695, %v929_v1  ;;  %vm945_vm10 = vcmp.gt.f32.partialorder %v929_v1, 0.0 }
 0x244   :  { %1543 = vpow2.f32 %v977_v45  ;;  %v614_v57 = vpop.xlane.xlu0 %613 }
 0x245   :  { %1545 = vpow2.f32 %v961_v55  ;;  %v829_v7 = vpop.f32.mrf.mxu2  ;;  %v652_v38 = vmax.f32 %v614_v57, 1e-20  ;;  %v2149_v21 = vpop.xlane.xlu2 %646 }
 0x246   :  { %v909_v10 = vmul.f32 %v1540_v6, %v829_v7  ;;  %v874_v0 = vpop.f32.mrf.mxu3  ;;  %v735_v13 = vpop.f32.mrf.mxu0  ;;  %1547 = vrcp.f32 %v661_v4  ;;  %v663_v52 = vmax.f32 %v2149_v21, 1e-20 }
 0x247   :  { %v912_v58 = vmul.f32 %v1542_v53, %v874_v0  ;;  %v901_v23 = vmul.f32 %v1538_v63, %v735_v13  ;;  %v644_v9 = vpop.xlane.xlu1 %643  ;;  %1549 = vrcp.f32 %v658_v61 }
 0x248   :  { %v938_v26 = vadd.f32 %v2125_v46, %v909_v10  ;;  %1551 = vrcp.f32 %v652_v38  ;;  %v662_v40 = vmax.f32 %v644_v9, 1e-20 }
 0x249   :  { %v2153_v25 = vadd.f32 %v2146_v8, %v912_v58  ;;  %v2156_v18 = vadd.f32 %v2131_v20, %v901_v23 }
 0x24a   :  { %v1544_v48 = vpop.eup %1543  ;;  %v979_v47 = vmul.f32 1.442695, %v938_v26  ;;  %vm954_vm11 = vcmp.gt.f32.partialorder %v938_v26, 0.0 }
 0x24b   :  { %v1546_v27 = vpop.eup %1545  ;;  %v985_v24 = vmul.f32 1.442695, %v2153_v25  ;;  %v1475_v28 = vadd.f32 -1.0, %v1544_v48  ;;  %v963_v30 = vmul.f32 1.442695, %v2156_v18  ;;  %vm946_vm12 = vcmp.gt.f32.partialorder %v2156_v18, 0.0 }
 0x24c   :  { %1553 = vpow2.f32 %v979_v47  ;;  %v1467_v32 = vadd.f32 -1.0, %v1546_v27  ;;  %v608_v36 = vpop.xlane.xlu0 %607  ;;  %v1548_v3 = vpop.eup %1547  ;;  %vm957_vm13 = vcmp.gt.f32.partialorder %v2153_v25, 0.0 }
 0x24d   :  { %1555 = vpow2.f32 %v985_v24  ;;  %v1550_v22 = vpop.eup %1549  ;;  %v1017_v62 = vsel %vm953_vm9, %v937_v11, %v1475_v28  ;;  %v650_v15 = vmax.f32 %v608_v36, 1e-20  ;;  %v620_v50 = vpop.xlane.xlu2 %619 }
 0x24e   :  { %1557 = vpow2.f32 %v963_v30  ;;  %v876_v41 = vpop.f32.mrf.mxu3  ;;  %v1552_v44 = vpop.eup %1551  ;;  %v1009_v60 = vsel %vm945_vm10, %v929_v1, %v1467_v32  ;;  %v1033_v33 = vpack.c.bf16 %v1017_v62, %v1017_v62  ;;  %v654_v17 = vmax.f32 %v620_v50, 1e-20 }
 0x24f   :  { %v913_v16 = vmul.f32 %v1548_v3, %v876_v41  ;;  %1559 = vrcp.f32 %v659_v29  ;;  %v611_v12 = vpop.xlane.xlu1 %610  ;;  %v1025_v14 = vpack.c.bf16 %v1009_v60, %v1009_v60 }
 0x250   :  { %1561 = vrcp.f32 %v653_v34  ;;  %v651_v5 = vmax.f32 %v611_v12, 1e-20  ;;  %v1130_v53 = vunpack.c.l.b16 %v1033_v33 }
 0x251   :  { %v2164_v35 = vadd.f32 %v2146_v8, %v913_v16  ;;  %1563 = vrcp.f32 %v662_v40  ;;  %v1053_v21 = vunpack.c.l.b16 %v1025_v14 }
 0x252   :  { %v1554_v37 = vpop.eup %1553  ;;  %v832_v43 = vpop.f32.mrf.mxu2  ;;  %1565 = vrcp.f32 %v650_v15 }
 0x253   :  { %v1556_v56 = vpop.eup %1555  ;;  %v1476_v31 = vadd.f32 -1.0, %v1554_v37  ;;  %v987_v54 = vmul.f32 1.442695, %v2164_v35  ;;  %v910_v11 = vmul.f32 %v1550_v22, %v832_v43  ;;  %v780_v42 = vpop.f32.mrf.mxu1  ;;  %vm958_vm14 = vcmp.gt.f32.partialorder %v2164_v35, 0.0 }
 0x254   :  { %v1558_v1 = vpop.eup %1557  ;;  %v904_v45 = vmul.f32 %v1552_v44, %v780_v42  ;;  %v1479_v57 = vadd.f32 -1.0, %v1556_v56  ;;  %v623_v22 = vpop.xlane.xlu0 %622 }
 0x255   :  { %v1018_v55 = vsel %vm954_vm11, %v938_v26, %v1476_v31  ;;  %v1468_v59 = vadd.f32 -1.0, %v1558_v1  ;;  %1567 = vpow2.f32 %v987_v54  ;;  %v2173_v49 = vadd.f32 %v2125_v46, %v910_v11  ;;  %v1560_v63 = vpop.eup %1559 }
 0x256   :  { %v1034_v4 = vpack.c.bf16 %v1018_v55, %v1018_v55  ;;  %v2176_v6 = vadd.f32 %v2166_v51, %v904_v45  ;;  %v1562_v7 = vpop.eup %1561  ;;  %1569 = vrcp.f32 %v663_v52  ;;  %v1021_v26 = vsel %vm957_vm13, %v2153_v25, %v1479_v57 }
 0x257   :  { %v1010_v61 = vsel %vm946_vm12, %v2156_v18, %v1468_v59  ;;  %v981_v10 = vmul.f32 1.442695, %v2173_v49  ;;  %v1564_v0 = vpop.eup %1563  ;;  %1571 = vrcp.f32 %v654_v17  ;;  %v1037_v3 = vpack.c.bf16 %v1021_v26, %v1021_v26 }
 0x258   :  { %v1131_v13 = vunpack.c.l.b16 %v1034_v4  ;;  %v1026_v19 = vpack.c.bf16 %v1010_v61, %v1010_v61  ;;  %v969_v38 = vmul.f32 1.442695, %v2176_v6  ;;  %v1566_v58 = vpop.eup %1565  ;;  %vm955_vm15 = vcmp.gt.f32.partialorder %v2173_v49, 0.0 }
 0x259   :  { %1573 = vpow2.f32 %v981_v10  ;;  %v1168_v56 = vunpack.c.l.b16 %v1037_v3  ;;  %vm949_vm0 = vcmp.gt.f32.partialorder %v2176_v6, 0.0 }
 0x25a   :  { %v1134_v23 = vpack.c.b16 %v1131_v13, %v1130_v53  ;;  %v1054_v9 = vunpack.c.l.b16 %v1026_v19  ;;  %1575 = vrcp.f32 %v651_v5  ;;  %v834_v48 = vpop.f32.mrf.mxu2  ;;  %v879_v18 = vpop.f32.mrf.mxu3 }
 0x25b   :  { %v1568_v47 = vpop.eup %1567  ;;  %1577 = vpow2.f32 %v969_v38  ;;  %v911_v27 = vmul.f32 %v1560_v63, %v834_v48  ;;  %v914_v24 = vmul.f32 %v1564_v0, %v879_v18  ;;  %v738_v28 = vpop.f32.mrf.mxu0 }
 0x25c   :  { %v782_v29 = vpop.f32.mrf.mxu1  ;;  %v1057_v30 = vpack.c.b16 %v1054_v9, %v1053_v21  ;;  %v1480_v32 = vadd.f32 -1.0, %v1568_v47  ;;  %v902_v34 = vmul.f32 %v1566_v58, %v738_v28  ;;  %1487 = vmatmul.msk.bf16.vlgmr.msra.gmra.mxu2 %vm211_vm1, %v1134_v23  ;;  %v1570_v39 = vpop.eup %1569 }
 0x25d   :  { %v905_v36 = vmul.f32 %v1562_v7, %v782_v29  ;;  %v940_v25 = vadd.f32 %v2125_v46, %v911_v27  ;;  %v2189_v40 = vadd.f32 %v2146_v8, %v914_v24  ;;  %v1572_v41 = vpop.eup %1571 }
 0x25e   :  { %v1022_v16 = vsel %vm958_vm14, %v2164_v35, %v1480_v32  ;;  %v2193_v62 = vadd.f32 %v2131_v20, %v902_v34  ;;  %1483 = vmatmul.msk.bf16.vlgmr.msra.gmra.mxu0 %vm211_vm1, %v1057_v30  ;;  %v655_v35 = vmax.f32 %v623_v22, 1e-20  ;;  %vm1384_vm14 = vcmp.lt.s32.totalorder %v1914_v2, 8 }
 0x25f   :  { %v934_v15 = vadd.f32 %v2166_v51, %v905_v36  ;;  %v1574_v44 = vpop.eup %1573  ;;  %v1038_v60 = vpack.c.bf16 %v1022_v16, %v1022_v16  ;;  %v983_v50 = vmul.f32 1.442695, %v940_v25  ;;  %v989_v46 = vmul.f32 1.442695, %v2189_v40 }
 0x260   :  { %v1576_v37 = vpop.eup %1575  ;;  %v965_v52 = vmul.f32 1.442695, %v2193_v62  ;;  %v1477_v31 = vadd.f32 -1.0, %v1574_v44  ;;  %vm956_vm2 = vcmp.gt.f32.partialorder %v940_v25, 0.0  ;;  %vm959_vm4 = vcmp.gt.f32.partialorder %v2189_v40, 0.0 }
 0x261   :  { %v1578_v43 = vpop.eup %1577  ;;  %v1169_v33 = vunpack.c.l.b16 %v1038_v60  ;;  %1579 = vpow2.f32 %v983_v50  ;;  %v971_v54 = vmul.f32 1.442695, %v934_v15  ;;  %vm950_vm3 = vcmp.gt.f32.partialorder %v934_v15, 0.0 }
 0x262   :  { %1581 = vpow2.f32 %v989_v46  ;;  %v881_v12 = vpop.f32.mrf.mxu3  ;;  %v1471_v55 = vadd.f32 -1.0, %v1578_v43  ;;  %v1019_v57 = vsel %vm955_vm15, %v2173_v49, %v1477_v31  ;;  %vm947_vm5 = vcmp.gt.f32.partialorder %v2193_v62, 0.0 }
 0x263   :  { %v1172_v11 = vpack.c.b16 %v1169_v33, %v1168_v56  ;;  %1583 = vpow2.f32 %v965_v52  ;;  %v915_v42 = vmul.f32 %v1570_v39, %v881_v12  ;;  %v740_v1 = vpop.f32.mrf.mxu0 }
 0x264   :  { %v785_v14 = vpop.f32.mrf.mxu1  ;;  %1585 = vpow2.f32 %v971_v54  ;;  %v903_v17 = vmul.f32 %v1576_v37, %v740_v1 }
 0x265   :  { %v906_v45 = vmul.f32 %v1572_v41, %v785_v14  ;;  %1587 = vrcp.f32 %v655_v35  ;;  %v944_v59 = vadd.f32 %v2146_v8, %v915_v42  ;;  %1489 = vmatmul.msk.bf16.vlgmr.msra.gmra.mxu3 %vm211_vm1, %v1172_v11  ;;  %v1013_v8 = vsel %vm949_vm0, %v2176_v6, %v1471_v55 }
 0x266   :  { %v932_v63 = vadd.f32 %v2131_v20, %v903_v17  ;;  %v1035_v20 = vpack.c.bf16 %v1019_v57, %v1019_v57  ;;  %v1029_v48 = vpack.c.bf16 %v1013_v8, %v1013_v8 }
 0x267   :  { %v2204_v4 = vadd.f32 %v2166_v51, %v906_v45  ;;  %v1580_v5 = vpop.eup %1579  ;;  %v991_v7 = vmul.f32 1.442695, %v944_v59  ;;  %vm960_vm7 = vcmp.gt.f32.partialorder %v944_v59, 0.0 }
 0x268   :  { %v1582_v53 = vpop.eup %1581  ;;  %v1478_v61 = vadd.f32 -1.0, %v1580_v5  ;;  %v967_v10 = vmul.f32 1.442695, %v932_v63  ;;  %v1132_v47 = vunpack.c.l.b16 %v1035_v20  ;;  %v1092_v39 = vunpack.c.l.b16 %v1029_v48 }
 0x269   :  { %v1584_v0 = vpop.eup %1583  ;;  %1589 = vpow2.f32 %v991_v7  ;;  %v973_v13 = vmul.f32 1.442695, %v2204_v4  ;;  %v1481_v38 = vadd.f32 -1.0, %v1582_v53  ;;  %vm948_vm8 = vcmp.gt.f32.partialorder %v932_v63, 0.0  ;;  %v1498_v7 = vld [vmem:[%s2272_s7] ss:$0 sm:$0xff] }
 0x26a   :  { %v1586_v19 = vpop.eup %1585  ;;  %1591 = vpow2.f32 %v967_v10  ;;  %v1020_v21 = vsel %vm956_vm2, %v940_v25, %v1478_v61  ;;  %v1469_v58 = vadd.f32 -1.0, %v1584_v0  ;;  %vm951_vm9 = vcmp.gt.f32.partialorder %v2204_v4, 0.0 }
 0x26b   :  { %v1588_v49 = vpop.eup %1587  ;;  %v1472_v23 = vadd.f32 -1.0, %v1586_v19  ;;  %1593 = vpow2.f32 %v973_v13  ;;  %v1036_v9 = vpack.c.bf16 %v1020_v21, %v1020_v21  ;;  %v1023_v29 = vsel %vm959_vm4, %v2189_v40, %v1481_v38 }
 0x26c   :  { %v787_v26 = vpop.f32.mrf.mxu1  ;;  %v1011_v34 = vsel %vm947_vm5, %v2193_v62, %v1469_v58 }
 0x26d   :  { %v907_v18 = vmul.f32 %v1588_v49, %v787_v26  ;;  %v1014_v6 = vsel %vm950_vm3, %v934_v15, %v1472_v23  ;;  %v1133_v27 = vunpack.c.l.b16 %v1036_v9  ;;  %v1039_v15 = vpack.c.bf16 %v1023_v29, %v1023_v29 }
 0x26e   :  { %v1030_v24 = vpack.c.bf16 %v1014_v6, %v1014_v6  ;;  %v1027_v40 = vpack.c.bf16 %v1011_v34, %v1011_v34 }
 0x26f   :  { %v936_v28 = vadd.f32 %v2166_v51, %v907_v18  ;;  %v1590_v30 = vpop.eup %1589  ;;  %v1135_v32 = vpack.c.b16 %v1133_v27, %v1132_v47  ;;  %v1170_v46 = vunpack.c.l.b16 %v1039_v15  ;;  %v1499_v18 = vld [vmem:[%s2273_s8] ss:$0 sm:$0xff] }
 0x270   :  { %v1592_v36 = vpop.eup %1591  ;;  %v1093_v3 = vunpack.c.l.b16 %v1030_v24  ;;  %v1482_v25 = vadd.f32 -1.0, %v1590_v30  ;;  %v1055_v43 = vunpack.c.l.b16 %v1027_v40 }
 0x271   :  { %v975_v41 = vmul.f32 1.442695, %v936_v28  ;;  %v1594_v16 = vpop.eup %1593  ;;  %v1470_v22 = vadd.f32 -1.0, %v1592_v36  ;;  %1488 = vmatmul.msk.bf16.gmra.mxu2 %vm211_vm1, %v1135_v32  ;;  %vm952_vm10 = vcmp.gt.f32.partialorder %v936_v28, 0.0 }
 0x272   :  { %v1096_v44 = vpack.c.b16 %v1093_v3, %v1092_v39  ;;  %v1024_v51 = vsel %vm960_vm7, %v944_v59, %v1482_v25  ;;  %v1473_v60 = vadd.f32 -1.0, %v1594_v16 }
 0x273   :  { %1595 = vpow2.f32 %v975_v41  ;;  %v1040_v50 = vpack.c.bf16 %v1024_v51, %v1024_v51  ;;  %v1012_v37 = vsel %vm948_vm8, %v932_v63, %v1470_v22 }
 0x274   :  { %1485 = vmatmul.msk.bf16.vlgmr.msrb.gmra.mxu1 %vm211_vm1, %v1096_v44  ;;  %v1028_v62 = vpack.c.bf16 %v1012_v37, %v1012_v37  ;;  %v1015_v35 = vsel %vm951_vm9, %v2204_v4, %v1473_v60 }
 0x275   :  { %v1171_v52 = vunpack.c.l.b16 %v1040_v50  ;;  %v1031_v11 = vpack.c.bf16 %v1015_v35, %v1015_v35 }
 0x276   :  { %v1056_v56 = vunpack.c.l.b16 %v1028_v62 }
 0x277   :  { %v1173_v33 = vpack.c.b16 %v1171_v52, %v1170_v46  ;;  %v1094_v14 = vunpack.c.l.b16 %v1031_v11 }
 0x278   :  { %v1058_v54 = vpack.c.b16 %v1056_v56, %v1055_v43 }
 0x279   :  { %v1596_v31 = vpop.eup %1595  ;;  %1490 = vmatmul.msk.bf16.gmra.mxu3 %vm211_vm1, %v1173_v33 }
 0x27a   :  { %v1474_v12 = vadd.f32 -1.0, %v1596_v31  ;;  %1484 = vmatmul.msk.bf16.gmra.mxu0 %vm211_vm1, %v1058_v54 }
 0x27c   :  { %v1016_v42 = vsel %vm952_vm10, %v936_v28, %v1474_v12 }
 0x27d   :  { %v1032_v1 = vpack.c.bf16 %v1016_v42, %v1016_v42 }
 0x27f   :  { %v1095_v17 = vunpack.c.l.b16 %v1032_v1 }
 0x281   :  { %v1097_v45 = vpack.c.b16 %v1095_v17, %v1094_v14  ;;  %v1629_v14 = vld [vmem:[%s2270_s5 + $0x8] sm:$0xff] }
 0x284   :  { %1486 = vmatmul.msk.bf16.gmra.mxu1 %vm211_vm1, %v1097_v45  ;;  %v1630_v45 = vld [vmem:[%s2270_s5] sm:$0xff] }
 0x2db   :  { %v1078_v55 = vpop.f32.mrf.mxu0 }
 0x2df   :  { %v1154_v59 = vpop.f32.mrf.mxu2 }
 0x2e3   :  { %v1080_v61 = vpop.f32.mrf.mxu0 }
 0x2e7   :  { %v1156_v0 = vpop.f32.mrf.mxu2 }
 0x2e8   :  { %v1192_v63 = vpop.f32.mrf.mxu3 }
 0x2f0   :  { %v1194_v20 = vpop.f32.mrf.mxu3 }
 0x2f1   :  { %v1116_v4 = vpop.f32.mrf.mxu1 }
 0x2f2   :  { %v1202_v57 = vadd.f32 %v1116_v4, %v1078_v55 }
 0x2f4   :  { %v1203_v5 = vadd.f32 %v1202_v57, %v1154_v59  ;;  %v1159_v58 = vpop.f32.mrf.mxu2 }
 0x2f6   :  { %v1204_v53 = vadd.f32 %v1203_v5, %v1192_v63  ;;  %v1631_v5 = vld [vmem:[%s2270_s5 + $0x18] sm:$0xff] }
 0x2f7   :  { %v1083_v21 = vpop.f32.mrf.mxu0 }
 0x2f8   :  { %v1218_v10 = vmul.f32 %v1498_v7, %v1204_v53  ;;  %v1234_v47 = vmul.f32 %v1499_v18, %v1204_v53 }
 0x2f9   :  { %v1118_v8 = vpop.f32.mrf.mxu1 }
 0x2fa   :  { %v1205_v13 = vadd.f32 %v1118_v8, %v1080_v61  ;;  %1222 = vadd.xlane.f32.xlu1 %v1218_v10 }
 0x2fc   :  { %v1206_v19 = vadd.f32 %v1205_v13, %v1156_v0  ;;  %v1197_v9 = vpop.f32.mrf.mxu3  ;;  %v1161_v30 = vpop.f32.mrf.mxu2 }
 0x2fe   :  { %v1207_v38 = vadd.f32 %v1206_v19, %v1194_v20 }
 0x2ff   :  { %v1085_v24 = vpop.f32.mrf.mxu0 }
 0x300   :  { %v1219_v49 = vmul.f32 %v1498_v7, %v1207_v38  ;;  %v1235_v39 = vmul.f32 %v1499_v18, %v1207_v38  ;;  %v1341_v16 = vpack.c.bf16 %v1207_v38, %v1204_v53  ;;  %v1632_v53 = vld [vmem:[%s2270_s5 + $0x10] sm:$0xff] }
 0x301   :  { %v1121_v23 = vpop.f32.mrf.mxu1 }
 0x302   :  { %v1208_v26 = vadd.f32 %v1121_v23, %v1083_v21  ;;  %1224 = vadd.xlane.f32.xlu2 %v1219_v49 }
 0x304   :  { %v1209_v48 = vadd.f32 %v1208_v26, %v1159_v58  ;;  %v1199_v34 = vpop.f32.mrf.mxu3 }
 0x306   :  { %v1210_v6 = vadd.f32 %v1209_v48, %v1197_v9 }
 0x308   :  { %v1220_v27 = vmul.f32 %v1498_v7, %v1210_v6  ;;  %v1236_v22 = vmul.f32 %v1499_v18, %v1210_v6 }
 0x309   :  { %v1123_v28 = vpop.f32.mrf.mxu1 }
 0x30a   :  { %v1211_v29 = vadd.f32 %v1123_v28, %v1085_v24  ;;  %1238 = vadd.xlane.f32.xlu2 %v1234_v47  ;;  %1226 = vadd.xlane.f32.xlu0 %v1220_v27 }
 0x30c   :  { %v1212_v32 = vadd.f32 %v1211_v29, %v1161_v30 }
 0x30e   :  { %v1213_v36 = vadd.f32 %v1212_v32, %v1199_v34 }
 0x310   :  { %v1342_v3 = vpack.c.bf16 %v1213_v36, %v1210_v6  ;;  %v1237_v25 = vmul.f32 %v1499_v18, %v1213_v36  ;;  %v1221_v41 = vmul.f32 %v1498_v7, %v1213_v36 }
 0x312   :  { %1240 = vadd.xlane.f32.xlu0 %v1235_v39  ;;  %1355 = vmatpush.bf16.msrb.mxu0 %v1342_v3 }
 0x313   :  { %1244 = vadd.xlane.f32.xlu2 %v1237_v25  ;;  %1228 = vadd.xlane.f32.xlu1 %v1221_v41  ;;  %v1500_v41 = vld [vmem:[%s2274_s9] ss:$0 sm:$0xff]  ;;  %s1659_s9 = smov [#allocation2]  }
 0x314   :  { %s1437_s20 = sshll.u32 %s1659_s9, 4  ;;  %s1438_s20 = int_to_ptr.vmem [resolvable:$true] %s1437_s20 }
 0x316   :  { %1356 = vmatpush.bf16.msrb.mxu0 %v1341_v16 }
 0x31b   :  { %1242 = vadd.xlane.f32.xlu1 %v1236_v22 }
 0x36d   :  { %v1223_v15 = vpop.xlane.xlu1 %1222 }
 0x36e   :  { %1246 = vxpose.xlu0.b32.start [1/4] (short) (narrow) %v1223_v15, 8 }
 0x375   :  { %v1225_v44 = vpop.xlane.xlu2 %1224 }
 0x376   :  { %1247 = vxpose.xlu0.b32.cont [2/4] (short) (narrow) %v1225_v44, 8 }
 0x37d   :  { %v1227_v51 = vpop.xlane.xlu0 %1226  ;;  %v1239_v60 = vpop.xlane.xlu2 %1238 }
 0x37e   :  { %1248 = vxpose.xlu0.b32.cont [3/4] (short) (narrow) %v1227_v51, 8 }
 0x385   :  { %v1241_v50 = vpop.xlane.xlu0 %1240 }
 0x386   :  { %v1229_v40 = vpop.xlane.xlu1 %1228  ;;  %v1245_v46 = vpop.xlane.xlu2 %1244 }
 0x387   :  { %1249 = vxpose.xlu0.b32.end [4/4] (short) (narrow) %v1229_v40, 8 }
 0x38e   :  { %v1243_v52 = vpop.xlane.xlu1 %1242 }
 0x413   :  { %v1262_v37 = vpop.trf.xlu0 }
 0x414   :  { %v1278_v62 = vperm.slane %v1262_v37, 0 }
 0x416   :  { %v1279_v43 = vadd.f32 %v1278_v62, %v1239_v60  ;;  %v1280_v56 = vadd.f32 %v1278_v62, %v1241_v50  ;;  %v1281_v33 = vadd.f32 %v1278_v62, %v1243_v52  ;;  %v1282_v35 = vadd.f32 %v1278_v62, %v1245_v46 }
 0x418   :  { %vm1284_vm1 = vcmp.ge.f32.partialorder %v1280_v56, 0.0  ;;  %v1288_v31 = vmul.f32 0.2, %v1280_v56  ;;  %vm1283_vm11 = vcmp.ge.f32.partialorder %v1279_v43, 0.0  ;;  %v1287_v54 = vmul.f32 0.2, %v1279_v43 }
 0x419   :  { %v1290_v42 = vmul.f32 0.2, %v1282_v35  ;;  %v1289_v1 = vmul.f32 0.2, %v1281_v33  ;;  %vm1286_vm12 = vcmp.ge.f32.partialorder %v1282_v35, 0.0  ;;  %vm1285_vm13 = vcmp.ge.f32.partialorder %v1281_v33, 0.0 }
 0x41a   :  { %v1292_v12 = vsel %vm1284_vm1, %v1280_v56, %v1288_v31  ;;  %v1291_v11 = vsel %vm1283_vm11, %v1279_v43, %v1287_v54 }
 0x41b   :  { %v1296_v17 = vadd.f32 %v1629_v14, %v1292_v12  ;;  %v1295_v55 = vadd.f32 %v1630_v45, %v1291_v11  ;;  %v1294_v4 = vsel %vm1286_vm12, %v1282_v35, %v1290_v42  ;;  %v1293_v57 = vsel %vm1285_vm13, %v1281_v33, %v1289_v1 }
 0x41c   :  { %v1298_v7 = vadd.f32 %v1631_v5, %v1294_v4  ;;  %v1297_v61 = vadd.f32 %v1632_v53, %v1293_v57 }
 0x41d   :  { %v1302_v59 = vsel %vm503_vm6, %v1296_v17, -inf  ;;  %v1299_v63 = vsel %vm503_vm6, %v1295_v55, -inf }
 0x41e   :  { %1303 = vmax.xlane.f32.xlu2 %v1302_v59  ;;  %1300 = vmax.xlane.f32.xlu1 %v1299_v63  ;;  %v1308_v10 = vsel %vm503_vm6, %v1298_v7, -inf  ;;  %v1305_v0 = vsel %vm503_vm6, %v1297_v61, -inf }
 0x426   :  { %1309 = vmax.xlane.f32.xlu2 %v1308_v10  ;;  %1306 = vmax.xlane.f32.xlu1 %v1305_v0 }
 0x491   :  { %v1304_v8 = vpop.xlane.xlu2 %1303  ;;  %v1301_v13 = vpop.xlane.xlu1 %1300 }
 0x492   :  { %v1312_v20 = vsub.f32 %v1296_v17, %v1304_v8  ;;  %v1311_v19 = vsub.f32 %v1295_v55, %v1301_v13 }
 0x494   :  { %v1317_v38 = vmul.f32 1.442695, %v1312_v20  ;;  %v1315_v21 = vmul.f32 1.442695, %v1311_v19 }
 0x496   :  { %1597 = vpow2.f32 %v1317_v38 }
 0x497   :  { %1599 = vpow2.f32 %v1315_v21 }
 0x499   :  { %v1310_v49 = vpop.xlane.xlu2 %1309  ;;  %v1307_v58 = vpop.xlane.xlu1 %1306 }
 0x49a   :  { %v1314_v23 = vsub.f32 %v1298_v7, %v1310_v49  ;;  %v1313_v26 = vsub.f32 %v1297_v61, %v1307_v58 }
 0x49c   :  { %v1598_v9 = vpop.eup %1597  ;;  %v1321_v48 = vmul.f32 1.442695, %v1314_v23  ;;  %v1319_v18 = vmul.f32 1.442695, %v1313_v26 }
 0x49d   :  { %v1600_v6 = vpop.eup %1599  ;;  %v1326_v47 = vsel %vm503_vm6, %v1598_v9, 0.0 }
 0x49e   :  { %v1339_v27 = vpack.c.bf16 %v1598_v9, %v1600_v6  ;;  %1601 = vpow2.f32 %v1321_v48  ;;  %1327 = vadd.xlane.f32.xlu2 %v1326_v47  ;;  %v1323_v24 = vsel %vm503_vm6, %v1600_v6, 0.0 }
 0x49f   :  { %1603 = vpow2.f32 %v1319_v18  ;;  %1324 = vadd.xlane.f32.xlu1 %v1323_v24 }
 0x4a0   :  { %1491 = vmatmul.msk.bf16.vlgmr.msrb.gmra.mxu0 %vm503_vm6, %v1339_v27 }
 0x4a4   :  { %v1602_v28 = vpop.eup %1601 }
 0x4a5   :  { %v1604_v29 = vpop.eup %1603  ;;  %v1332_v30 = vsel %vm503_vm6, %v1602_v28, 0.0 }
 0x4a6   :  { %1333 = vadd.xlane.f32.xlu2 %v1332_v30  ;;  %v1329_v32 = vsel %vm503_vm6, %v1604_v29, 0.0  ;;  %v1340_v34 = vpack.c.bf16 %v1602_v28, %v1604_v29 }
 0x4a7   :  { %1330 = vadd.xlane.f32.xlu1 %v1329_v32 }
 0x4b0   :  { %1492 = vmatmul.msk.bf16.gmra.mxu0 %vm503_vm6, %v1340_v34 }
 0x511   :  { %v1328_v3 = vpop.xlane.xlu2 %1327 }
 0x512   :  { %v1325_v36 = vpop.xlane.xlu1 %1324  ;;  %v1336_v25 = vmax.f32 %v1328_v3, 1e-20 }
 0x513   :  { %v1335_v39 = vmax.f32 %v1325_v36, 1e-20 }
 0x515   :  { %1605 = vrcp.f32 %v1335_v39 }
 0x516   :  { %1607 = vrcp.f32 %v1336_v25 }
 0x519   :  { %v1334_v46 = vpop.xlane.xlu2 %1333 }
 0x51a   :  { %v1331_v44 = vpop.xlane.xlu1 %1330  ;;  %v1338_v56 = vmax.f32 %v1334_v46, 1e-20 }
 0x51b   :  { %v1606_v16 = vpop.eup %1605  ;;  %v1337_v60 = vmax.f32 %v1331_v44, 1e-20 }
 0x51c   :  { %v1608_v50 = vpop.eup %1607 }
 0x51d   :  { %v1358_v22 = vpop.f32.mrf.mxu0  ;;  %1609 = vrcp.f32 %v1337_v60 }
 0x51e   :  { %v1372_v15 = vmul.f32 %v1606_v16, %v1358_v22  ;;  %1611 = vrcp.f32 %v1338_v56 }
 0x520   :  { %v1380_v51 = vadd.f32 %v1500_v41, %v1372_v15 }
 0x522   :  { %v1385_v40 = vsel %vm1384_vm14, %v1380_v51, -1e+30 }
 0x523   :  { %1389 = vmax.xlane.f32.xlu1 %v1385_v40  ;;  %v1610_v33 = vpop.eup %1609 }
 0x524   :  { %v1612_v11 = vpop.eup %1611 }
 0x525   :  { %v1360_v37 = vpop.f32.mrf.mxu0 }
 0x526   :  { %v1373_v62 = vmul.f32 %v1608_v50, %v1360_v37 }
 0x528   :  { %v1381_v52 = vadd.f32 %v1500_v41, %v1373_v62 }
 0x52a   :  { %v1386_v43 = vsel %vm1384_vm14, %v1381_v52, -1e+30 }
 0x52b   :  { %1391 = vmax.xlane.f32.xlu2 %v1386_v43 }
 0x52d   :  { %v1363_v35 = vpop.f32.mrf.mxu0 }
 0x52e   :  { %v1374_v31 = vmul.f32 %v1610_v33, %v1363_v35 }
 0x530   :  { %v1382_v54 = vadd.f32 %v1500_v41, %v1374_v31 }
 0x532   :  { %v1387_v12 = vsel %vm1384_vm14, %v1382_v54, -1e+30 }
 0x533   :  { %1393 = vmax.xlane.f32.xlu1 %v1387_v12 }
 0x535   :  { %v1365_v42 = vpop.f32.mrf.mxu0 }
 0x536   :  { %v1375_v1 = vmul.f32 %v1612_v11, %v1365_v42 }
 0x538   :  { %v1383_v14 = vadd.f32 %v1500_v41, %v1375_v1 }
 0x53a   :  { %v1388_v17 = vsel %vm1384_vm14, %v1383_v14, -1e+30 }
 0x53b   :  { %1395 = vmax.xlane.f32.xlu2 %v1388_v17 }
 0x596   :  { %v1390_v45 = vpop.xlane.xlu1 %1389 }
 0x597   :  { %v1397_v55 = vsub.f32 %v1385_v40, %v1390_v45 }
 0x599   :  { %v1401_v59 = vmul.f32 1.442695, %v1397_v55 }
 0x59b   :  { %1613 = vpow2.f32 %v1401_v59 }
 0x59e   :  { %v1392_v63 = vpop.xlane.xlu2 %1391 }
 0x59f   :  { %v1398_v4 = vsub.f32 %v1386_v43, %v1392_v63 }
 0x5a1   :  { %v1614_v57 = vpop.eup %1613  ;;  %v1403_v5 = vmul.f32 1.442695, %v1398_v4 }
 0x5a2   :  { %1409 = vadd.xlane.f32.xlu1 %v1614_v57 }
 0x5a3   :  { %1615 = vpow2.f32 %v1403_v5 }
 0x5a6   :  { %v1394_v7 = vpop.xlane.xlu1 %1393 }
 0x5a7   :  { %v1399_v53 = vsub.f32 %v1387_v12, %v1394_v7 }
 0x5a9   :  { %v1616_v61 = vpop.eup %1615  ;;  %v1405_v10 = vmul.f32 1.442695, %v1399_v53 }
 0x5aa   :  { %1411 = vadd.xlane.f32.xlu2 %v1616_v61 }
 0x5ab   :  { %1617 = vpow2.f32 %v1405_v10 }
 0x5ae   :  { %v1396_v0 = vpop.xlane.xlu2 %1395 }
 0x5af   :  { %v1400_v2 = vsub.f32 %v1388_v17, %v1396_v0 }
 0x5b1   :  { %v1618_v8 = vpop.eup %1617  ;;  %v1407_v13 = vmul.f32 1.442695, %v1400_v2 }
 0x5b2   :  { %1413 = vadd.xlane.f32.xlu1 %v1618_v8 }
 0x5b3   :  { %1619 = vpow2.f32 %v1407_v13 }
 0x5b9   :  { %v1620_v20 = vpop.eup %1619 }
 0x5ba   :  { %1415 = vadd.xlane.f32.xlu2 %v1620_v20 }
 0x615   :  { %v1410_v19 = vpop.xlane.xlu1 %1409 }
 0x616   :  { %1621 = vlog2.f32 %v1410_v19 }
 0x61c   :  { %v1622_v38 = vpop.eup %1621 }
 0x61d   :  { %v1418_v21 = vmul.f32 0.6931472, %v1622_v38  ;;  %v1412_v49 = vpop.xlane.xlu2 %1411 }
 0x61e   :  { %1623 = vlog2.f32 %v1412_v49 }
 0x61f   :  { %v1425_v58 = vsub.f32 %v1397_v55, %v1418_v21 }
 0x621   :  { %1429 = vst [vmem:[#allocation2] sm:$0xff] %v1425_v58 }
 0x624   :  { %v1624_v23 = vpop.eup %1623 }
 0x625   :  { %v1420_v26 = vmul.f32 0.6931472, %v1624_v23  ;;  %v1414_v9 = vpop.xlane.xlu1 %1413 }
 0x626   :  { %1625 = vlog2.f32 %v1414_v9 }
 0x627   :  { %v1426_v48 = vsub.f32 %v1398_v4, %v1420_v26 }
 0x629   :  { %1430 = vst [vmem:[#allocation2 + $0x8] sm:$0xff] %v1426_v48 }
 0x62c   :  { %v1626_v18 = vpop.eup %1625 }
 0x62d   :  { %v1422_v6 = vmul.f32 0.6931472, %v1626_v18  ;;  %v1416_v47 = vpop.xlane.xlu2 %1415 }
 0x62e   :  { %1627 = vlog2.f32 %v1416_v47 }
 0x62f   :  { %v1427_v27 = vsub.f32 %v1399_v53, %v1422_v6 }
 0x631   :  { %1431 = vst [vmem:[#allocation2 + $0x10] sm:$0xff] %v1427_v27 }
 0x634   :  { %v1628_v24 = vpop.eup %1627 }
 0x635   :  { %v1424_v28 = vmul.f32 0.6931472, %v1628_v24 }
 0x637   :  { %v1428_v29 = vsub.f32 %v1400_v2, %v1424_v28 }
 0x639   :  { %1432 = vst [vmem:[#allocation2 + $0x18] sm:$0xff] %v1428_v29 }
 0x63a   :  { %1445 = dma.vmem_to_hbm [thread:$0]  %s1438_s20, 512, %s1440_s23, [#allocation3], %s1660_s24, %s1660_s24, %s1661_s25  }
 0x63b   :  { %1657 = dma.done.wait [#allocation3], 512  }
 0x63c   :  { %1658 = vsyncadd [#allocation3], 4294966784 }
 0x63d   :  { %1450 = vsyncpa [#allocation3], 1 }

</bundles_post_ra>
